<compile_context>
chip_gen: v6e
topology: v6e:2x2x1
jax: 0.10.0
libtpu: 0.0.40
codegen_flags: <defaults>
</compile_context>

<pallas_src>
import jax
import jax.numpy as jnp
from jax.experimental import pallas as pl
from jax.experimental.pallas import tpu as pltpu


def _round_up(x, m):
    return (x + m - 1) // m * m


def _tpu_budgets():
    """Derive a VMEM limit and TensorCore count from the device (safe fallbacks)."""
    vmem_cap = 128 * 1024 * 1024
    num_cores = 1
    try:
        info = pltpu.get_tpu_info()
        vmem_cap = int(getattr(info, "vmem_capacity_bytes", vmem_cap) or vmem_cap)
        for name in ("num_cores", "num_tensorcores", "tensorcores_per_chip",
                     "cores_per_chip"):
            val = getattr(info, name, None)
            if isinstance(val, int) and val > 0:
                num_cores = val
                break
    except Exception:
        pass
    # ~half of physical VMEM as the scoped limit: 32 MiB on v7x, 64 MiB on v5e/v6e.
    vmem_limit = min(max(vmem_cap // 2, 32 * 1024 * 1024), 100 * 1024 * 1024)
    return vmem_limit, num_cores


def _message_kernel(idx_send_ref, idx_rec_col_ref, idx_rec_row_ref, edge_attr_ref,
                    xw_ref, w1e_ref, b1_ref, w2_ref, b2_ref, w3_ref, b3_ref,
                    out_ref):
    """One edge-tile step of MessageLayer; out_ref is the resident f32 accumulator."""
    # Zero the resident accumulator at the first edge step of this shard.
    @pl.when(pl.program_id(1) == 0)
    def _init():
        out_ref[...] = jnp.zeros_like(out_ref)

    bf16 = jnp.bfloat16
    e_t = idx_send_ref.shape[0]
    n_tot = xw_ref.shape[0]

    # --- fused gather + layer-1 (send/rec blocks): two-hot [E_t, N_total] @ XW.
    # Send / receive indices live in disjoint column ranges (rec offset by N_send in the
    # wrapper); padded edges carry -1 and select nothing. Built directly as bf16 (exact).
    # TODO(synk): the one/two-hot gather+scatter is O(E*N) — for large node tables switch
    # to a scalar-prefetch / manual-DMA row gather and a two-pass (messages->HBM) scatter.
    col = jax.lax.broadcasted_iota(jnp.int32, (e_t, n_tot), 1)
    twohot = ((col == idx_send_ref[...]) | (col == idx_rec_col_ref[...])).astype(bf16)
    h = jnp.dot(twohot, xw_ref[...], preferred_element_type=jnp.float32)
    h = h + jnp.dot(edge_attr_ref[...], w1e_ref[...], preferred_element_type=jnp.float32)
    h = h + b1_ref[...]
    h = h * jax.nn.sigmoid(h)                               # SiLU in f32 (VPU/EUP)

    # --- message_mlp layer 2 (bf16 MXU operands, f32 accumulation).
    m = jnp.dot(h.astype(bf16), w2_ref[...], preferred_element_type=jnp.float32) + b2_ref[...]
    m = m * jax.nn.sigmoid(m)                               # messages [E_t, h_pad], f32

    # --- edge_inf_mlp: Linear(H -> 1) + Sigmoid as a VPU multiply + lane reduce.
    logits = jnp.sum(m * w3_ref[...], axis=-1, keepdims=True) + b3_ref[...]
    weighted = m * jax.nn.sigmoid(logits)                   # [E_t, h_pad], f32

    # --- scatter_add over receivers: one-hot [N_out, E_t] bf16 MXU matmul, f32 accum.
    n_out = out_ref.shape[0]
    row_ids = jax.lax.broadcasted_iota(jnp.int32, (n_out, e_t), 0)
    oh_scatter = (row_ids == idx_rec_row_ref[...]).astype(bf16)
    out_ref[...] += jnp.dot(oh_scatter, weighted.astype(bf16),
                            preferred_element_type=jnp.float32)


def message_layer_pallas(x_send, x_rec, index_send, index_rec, edge_attr, params,
                         dim_size=None, edge_tile=512):
    """Pallas implementation of MessageLayer.forward."""
    w1, b1, w2, b2, w3, b3 = params
    n_send, num_hidden = x_send.shape
    n_rec = x_rec.shape[0]
    n_edges, num_inv = edge_attr.shape

    if dim_size is None:
        # Static output row count keeps dispatch async and shapes stable.
        # TODO(synk): PyTorch's scatter_add default is the data-dependent index_rec.max()+1.
        dim_size = n_rec

    f32, bf16 = jnp.float32, jnp.bfloat16
    h_pad = _round_up(num_hidden, 128)
    n_tot = n_send + n_rec
    n_tot_pad = _round_up(n_tot, 8)
    n_out_pad = _round_up(dim_size, 8)

    vmem_limit, num_cores = _tpu_budgets()

    # --- edge tile: as large as the VMEM budget allows (grid-step overhead ~600 cyc).
    # TODO(synk): if the [n_out_pad, h_pad] accumulator itself outgrows VMEM (dim_size of
    # many thousands), re-introduce N_out tiling or a two-pass kernel.
    resident_bytes = (2 * (n_tot_pad + num_inv + h_pad) * h_pad   # xw, w1e, w2 (bf16)
                      + 4 * (3 * h_pad + 1)                       # biases / w3 / b3 (f32)
                      + 4 * n_out_pad * h_pad)                    # resident f32 accumulator

    def _step_bytes(et):
        # two-hot + scatter one-hot (bf16) + ~4 f32 [et, h_pad] temporaries
        # + double-buffered edge-side input blocks (3 x i32 indices, bf16 edge_attr).
        return et * (2 * n_tot_pad + 2 * n_out_pad + 16 * h_pad + 2 * (3 * 4 + 2 * num_inv))

    budget = max(vmem_limit // 2 - resident_bytes, 1 << 20)
    e_tile_cap = max(128, int(edge_tile))
    while e_tile_cap > 128 and _step_bytes(e_tile_cap) > budget:
        e_tile_cap //= 2

    e_unit = _round_up(max(n_edges, 1), 8)
    if e_unit <= e_tile_cap:
        e_tile = e_unit                          # a single edge tile covers everything
    else:
        e_tile = _round_up(e_tile_cap, 128)      # keep the (1, e_tile) index blocks lane-dense

    e_steps_total = pl.cdiv(n_edges, e_tile)
    # v7x megacore: shard the edge axis across TensorCores (per-core partial outputs,
    # summed below). Collapses to one shard on 1-TC chips / single-tile problems.
    shards = min(num_cores, e_steps_total) if e_steps_total >= 2 else 1
    shards = max(int(shards), 1)
    e_steps = pl.cdiv(e_steps_total, shards)
    e_pad = shards * e_steps * e_tile

    # --- edge-side inputs, padded along edges (padded edges carry index -1).
    pad_e = e_pad - n_edges
    idx_send_i32 = index_send.astype(jnp.int32)
    idx_rec_i32 = index_rec.astype(jnp.int32)
    idx_send_col = jnp.pad(idx_send_i32, (0, pad_e), constant_values=-1).reshape(e_pad, 1)
    idx_rec_two = jnp.where(idx_rec_i32 >= 0, idx_rec_i32 + n_send, -1)   # two-hot column
    idx_rec_col = jnp.pad(idx_rec_two, (0, pad_e), constant_values=-1).reshape(e_pad, 1)
    idx_rec_row = jnp.pad(idx_rec_i32, (0, pad_e), constant_values=-1).reshape(1, e_pad)
    edge_attr_p = jnp.pad(edge_attr.astype(f32), ((0, pad_e), (0, 0))).astype(bf16)

    # --- parameters: fuse gather + layer-1 (send/rec) into XW, hoist all bf16 casts here.
    pad_h = h_pad - num_hidden
    w1 = w1.astype(f32)
    xw = jnp.concatenate(
        [x_send.astype(f32) @ w1[:num_hidden],
         x_rec.astype(f32) @ w1[num_hidden:2 * num_hidden]], axis=0)      # [n_tot, H], f32
    xw_p = jnp.pad(xw, ((0, n_tot_pad - n_tot), (0, pad_h))).astype(bf16)
    w1e_p = jnp.pad(w1[2 * num_hidden:], ((0, 0), (0, pad_h))).astype(bf16)
    b1_p = jnp.pad(b1.astype(f32), (0, pad_h)).reshape(1, h_pad)
    w2_p = jnp.pad(w2.astype(f32), ((0, pad_h), (0, pad_h))).astype(bf16)
    b2_p = jnp.pad(b2.astype(f32), (0, pad_h)).reshape(1, h_pad)
    w3_p = jnp.pad(w3.astype(f32).reshape(-1), (0, pad_h)).reshape(1, h_pad)
    b3_p = b3.astype(f32).reshape(1, 1)

    grid = (shards, e_steps)

    def edge_block(cols):
        return pl.BlockSpec((e_tile, cols), lambda s, e: (s * e_steps + e, 0))

    row_block = pl.BlockSpec((1, e_tile), lambda s, e: (0, s * e_steps + e))

    def resident_block(shape, single_buffer):
        # Constant-index resident blocks: double-buffering them only wastes VMEM.
        if single_buffer and hasattr(pl, "Buffered"):
            try:
                return pl.BlockSpec(shape, lambda s, e: (0, 0),
                                    pipeline_mode=pl.Buffered(1))
            except TypeError:
                pass
        return pl.BlockSpec(shape, lambda s, e: (0, 0))

    out_spec = pl.BlockSpec((n_out_pad, h_pad), lambda s, e: (s, 0))   # resident accumulator

    flops = 2 * e_pad * (n_tot_pad * h_pad        # fused two-hot gather + layer-1 (send/rec)
                         + num_inv * h_pad        # edge_attr part of layer 1
                         + h_pad * h_pad          # layer 2
                         + h_pad                  # edge gate
                         + n_out_pad * h_pad)     # scatter matmul
    bytes_accessed = (e_pad * (3 * 4 + 2 * num_inv)
                      + 2 * (n_tot_pad + num_inv + h_pad) * h_pad
                      + 4 * (3 * h_pad + 1)
                      + 4 * shards * n_out_pad * h_pad)
    cost = pl.CostEstimate(flops=int(flops),
                           transcendentals=int(e_pad * (2 * h_pad + 1)),
                           bytes_accessed=int(bytes_accessed))

    def _run(single_buffer):
        in_specs = [
            edge_block(1),                                     # index_send (column form)
            edge_block(1),                                     # index_rec + n_send (two-hot col)
            row_block,                                         # index_rec (row form, scatter)
            edge_block(num_inv),                               # edge_attr (bf16)
            resident_block((n_tot_pad, h_pad), single_buffer),  # XW (bf16)
            resident_block((num_inv, h_pad), single_buffer),    # W1_edge (bf16)
            resident_block((1, h_pad), single_buffer),           # b1
            resident_block((h_pad, h_pad), single_buffer),       # W2 (bf16)
            resident_block((1, h_pad), single_buffer),            # b2
            resident_block((1, h_pad), single_buffer),            # w3 (row form)
            resident_block((1, 1), single_buffer),                # b3
        ]
        return pl.pallas_call(
            _message_kernel,
            out_shape=jax.ShapeDtypeStruct((shards * n_out_pad, h_pad), f32),
            grid_spec=pltpu.PrefetchScalarGridSpec(
                num_scalar_prefetch=0,
                grid=grid,
                in_specs=in_specs,
                out_specs=out_spec,
            ),
            compiler_params=pltpu.CompilerParams(
                # Leading shard axis is independent (megacore-parallel on v7x);
                # the edge axis reduces into the resident accumulator.
                dimension_semantics=("parallel", "arbitrary"),
                vmem_limit_bytes=int(vmem_limit),
            ),
            cost_estimate=cost,
        )(idx_send_col, idx_rec_col, idx_rec_row, edge_attr_p,
          xw_p, w1e_p, b1_p, w2_p, b2_p, w3_p, b3_p)

    try:
        out_padded = _run(True)
    except Exception:
        # pipeline_mode=pl.Buffered(1) unsupported on this JAX/libtpu: plain double-buffering.
        out_padded = _run(False)

    if shards > 1:
        out_padded = out_padded.reshape(shards, n_out_pad, h_pad).sum(axis=0)
    return out_padded[:dim_size, :num_hidden]


def message_layer_reference(x_send, x_rec, index_send, index_rec, edge_attr, params,
                            dim_size):
    """Pure-JAX (f32) reference matching the PyTorch forward."""
    w1, b1, w2, b2, w3, b3 = params
    state = jnp.concatenate([x_send[index_send], x_rec[index_rec], edge_attr], axis=1)
    h = state @ w1 + b1
    h = h * jax.nn.sigmoid(h)
    m = h @ w2 + b2
    m = m * jax.nn.sigmoid(m)
    ew = jax.nn.sigmoid(m @ w3 + b3)
    return jax.ops.segment_sum(m * ew, index_rec, num_segments=dim_size)


def init_params(key, num_hidden, num_inv):
    d_in = 2 * num_hidden + num_inv
    k1, k2, k3 = jax.random.split(key, 3)
    # Weights stored as [in, out] so the kernel computes x @ W + b (== PyTorch x @ W.T + b).
    w1 = jax.random.normal(k1, (d_in, num_hidden), jnp.float32) * 0.1
    b1 = jnp.zeros((num_hidden,), jnp.float32)
    w2 = jax.random.normal(k2, (num_hidden, num_hidden), jnp.float32) * 0.1
    b2 = jnp.zeros((num_hidden,), jnp.float32)
    w3 = jax.random.normal(k3, (num_hidden, 1), jnp.float32) * 0.1
    b3 = jnp.zeros((1,), jnp.float32)
    return (w1, b1, w2, b2, w3, b3)


if __name__ == "__main__":
    def run_case(n_send, n_rec, n_edges, num_hidden, num_inv, edge_tile, key):
        kx1, kx2, ki1, ki2, ke, kp = jax.random.split(key, 6)
        x_send = jax.random.normal(kx1, (n_send, num_hidden), jnp.float32)
        x_rec = jax.random.normal(kx2, (n_rec, num_hidden), jnp.float32)
        index_send = jax.random.randint(ki1, (n_edges,), 0, n_send, jnp.int32)
        index_rec = jax.random.randint(ki2, (n_edges,), 0, n_rec, jnp.int32)
        edge_attr = jax.random.normal(ke, (n_edges, num_inv), jnp.float32)
        params = init_params(kp, num_hidden, num_inv)

        out = message_layer_pallas(x_send, x_rec, index_send, index_rec, edge_attr,
                                   params, edge_tile=edge_tile)
        out = jax.block_until_ready(out)

        ref = message_layer_reference(x_send, x_rec, index_send, index_rec, edge_attr,
                                      params, dim_size=n_rec)
        assert out.shape == ref.shape, (out.shape, ref.shape)
        max_err = float(jnp.max(jnp.abs(out - ref)))
        # bf16 MXU operands (with f32 accumulation) loosen tolerance vs. the f32 reference.
        assert jnp.allclose(out, ref, atol=5e-2, rtol=5e-2), f"mismatch vs reference: {max_err}"

    key = jax.random.PRNGKey(0)
    k1, k2 = jax.random.split(key)
    # Single edge-tile case (the module's nominal small shapes).
    run_case(16, 16, 64, 32, 8, 512, k1)
    # Multi-tile case: exercises padded (-1) edges, multi-step accumulation into the
    # resident output, and (on multi-core chips) the edge-shard partial-sum path.
    run_case(24, 40, 300, 32, 8, 128, k2)

    print("KERNEL_OK")
</pallas_src>

<mosaic_0001>
module attributes {stable_mosaic.version = 11 : i64} {
  func.func @_message_kernel(%arg0: i32, %arg1: i32, %arg2: memref<64x1xi32, #tpu.memory_space<vmem>>, %arg3: memref<64x1xi32, #tpu.memory_space<vmem>>, %arg4: memref<1x64xi32, #tpu.memory_space<vmem>>, %arg5: memref<64x8xbf16, #tpu.memory_space<vmem>>, %arg6: memref<32x128xbf16, #tpu.memory_space<vmem>>, %arg7: memref<8x128xbf16, #tpu.memory_space<vmem>>, %arg8: memref<1x128xf32, #tpu.memory_space<vmem>>, %arg9: memref<128x128xbf16, #tpu.memory_space<vmem>>, %arg10: memref<1x128xf32, #tpu.memory_space<vmem>>, %arg11: memref<1x128xf32, #tpu.memory_space<vmem>>, %arg12: memref<1x1xf32, #tpu.memory_space<vmem>>, %arg13: memref<16x128xf32, #tpu.memory_space<vmem>>) attributes {dimension_semantics = [#tpu.dimension_semantics<parallel>, #tpu.dimension_semantics<arbitrary>], iteration_bounds = array<i64: 1, 1>, scalar_prefetch = 0 : i64, scratch_operands = 0 : i64, tpu.core_type = #tpu.core_type<tc>, window_params = [{transform_indices = @transform_0, window_bounds = array<i64: 64, 1>}, {transform_indices = @transform_1, window_bounds = array<i64: 64, 1>}, {transform_indices = @transform_2, window_bounds = array<i64: 1, 64>}, {transform_indices = @transform_3, window_bounds = array<i64: 64, 8>}, {pipeline_mode = #tpu.pipeline_mode<synchronous>, transform_indices = @transform_4, window_bounds = array<i64: 32, 128>}, {pipeline_mode = #tpu.pipeline_mode<synchronous>, transform_indices = @transform_5, window_bounds = array<i64: 8, 128>}, {pipeline_mode = #tpu.pipeline_mode<synchronous>, transform_indices = @transform_6, window_bounds = array<i64: 1, 128>}, {pipeline_mode = #tpu.pipeline_mode<synchronous>, transform_indices = @transform_7, window_bounds = array<i64: 128, 128>}, {pipeline_mode = #tpu.pipeline_mode<synchronous>, transform_indices = @transform_8, window_bounds = array<i64: 1, 128>}, {pipeline_mode = #tpu.pipeline_mode<synchronous>, transform_indices = @transform_9, window_bounds = array<i64: 1, 128>}, {pipeline_mode = #tpu.pipeline_mode<synchronous>, transform_indices = @transform_10, window_bounds = array<i64: 1, 1>}, {transform_indices = @transform_11, window_bounds = array<i64: 16, 128>}]} {
    %c0_i32 = arith.constant 0 : i32
    %0 = arith.cmpi eq, %arg1, %c0_i32 : i32
    %1 = arith.extui %0 : i1 to i32
    %c0_i32_0 = arith.constant 0 : i32
    %2 = arith.cmpi ne, %1, %c0_i32_0 : i32
    scf.if %2 {
      %cst_33 = arith.constant 0.000000e+00 : f32
      %68 = vector.broadcast %cst_33 : f32 to vector<16x128xf32>
      %c0_34 = arith.constant 0 : index
      %c0_35 = arith.constant 0 : index
      %69 = vector.load %arg13[%c0_34, %c0_35] : memref<16x128xf32, #tpu.memory_space<vmem>>, vector<16x128xf32>
      tpu.vector_store %arg13[%c0_34, %c0_35], %68 {strides = array<i32>} : memref<16x128xf32, #tpu.memory_space<vmem>>, vector<16x128xf32>,
    } else {
    }
    %3 = tpu.iota {dimensions = array<i32: 1>} : vector<64x32xi32>
    %c0 = arith.constant 0 : index
    %c0_1 = arith.constant 0 : index
    %4 = vector.load %arg2[%c0, %c0_1] : memref<64x1xi32, #tpu.memory_space<vmem>>, vector<64x1xi32>
    %5 = vector.broadcast %4 : vector<64x1xi32> to vector<64x32xi32>
    %6 = arith.cmpi eq, %3, %5 : vector<64x32xi32>
    %c0_2 = arith.constant 0 : index
    %c0_3 = arith.constant 0 : index
    %7 = vector.load %arg3[%c0_2, %c0_3] : memref<64x1xi32, #tpu.memory_space<vmem>>, vector<64x1xi32>
    %8 = vector.broadcast %7 : vector<64x1xi32> to vector<64x32xi32>
    %9 = arith.cmpi eq, %3, %8 : vector<64x32xi32>
    %10 = arith.ori %6, %9 : vector<64x32xi1>
    %11 = arith.extui %10 : vector<64x32xi1> to vector<64x32xi32>
    %12 = arith.sitofp %11 : vector<64x32xi32> to vector<64x32xf32>
    %13 = arith.truncf %12 : vector<64x32xf32> to vector<64x32xbf16>
    %c0_4 = arith.constant 0 : index
    %c0_5 = arith.constant 0 : index
    %14 = vector.load %arg6[%c0_4, %c0_5] : memref<32x128xbf16, #tpu.memory_space<vmem>>, vector<32x128xbf16>
    %cst = arith.constant dense<0.000000e+00> : vector<64x128xf32>
    %15 = tpu.matmul %13, %14, %cst {dimension_numbers = #tpu.dot_dimension_numbers<[1], [0], [0], [1], [0, 0, 1, 1], [], []>} : vector<64x32xbf16>, vector<32x128xbf16>, vector<64x128xf32> -> vector<64x128xf32>
    %c0_6 = arith.constant 0 : index
    %c0_7 = arith.constant 0 : index
    %16 = vector.load %arg5[%c0_6, %c0_7] : memref<64x8xbf16, #tpu.memory_space<vmem>>, vector<64x8xbf16>
    %c0_8 = arith.constant 0 : index
    %c0_9 = arith.constant 0 : index
    %17 = vector.load %arg7[%c0_8, %c0_9] : memref<8x128xbf16, #tpu.memory_space<vmem>>, vector<8x128xbf16>
    %cst_10 = arith.constant dense<0.000000e+00> : vector<64x128xf32>
    %18 = tpu.matmul %16, %17, %cst_10 {dimension_numbers = #tpu.dot_dimension_numbers<[1], [0], [0], [1], [0, 0, 1, 1], [], []>} : vector<64x8xbf16>, vector<8x128xbf16>, vector<64x128xf32> -> vector<64x128xf32>
    %19 = arith.addf %15, %18 : vector<64x128xf32>
    %c0_11 = arith.constant 0 : index
    %c0_12 = arith.constant 0 : index
    %20 = vector.load %arg8[%c0_11, %c0_12] : memref<1x128xf32, #tpu.memory_space<vmem>>, vector<1x128xf32>
    %21 = vector.broadcast %20 : vector<1x128xf32> to vector<64x128xf32>
    %22 = arith.addf %19, %21 : vector<64x128xf32>
    %23 = arith.negf %22 : vector<64x128xf32>
    %24 = math.exp %23 : vector<64x128xf32>
    %cst_13 = arith.constant 1.000000e+00 : f32
    %25 = vector.broadcast %cst_13 : f32 to vector<64x128xf32>
    %26 = arith.addf %25, %24 : vector<64x128xf32>
    %27 = arith.divf %25, %26 : vector<64x128xf32>
    %28 = arith.mulf %22, %27 : vector<64x128xf32>
    %29 = arith.truncf %28 : vector<64x128xf32> to vector<64x128xbf16>
    %c0_14 = arith.constant 0 : index
    %c0_15 = arith.constant 0 : index
    %30 = vector.load %arg9[%c0_14, %c0_15] : memref<128x128xbf16, #tpu.memory_space<vmem>>, vector<128x128xbf16>
    %cst_16 = arith.constant dense<0.000000e+00> : vector<64x128xf32>
    %31 = tpu.matmul %29, %30, %cst_16 {dimension_numbers = #tpu.dot_dimension_numbers<[1], [0], [0], [1], [0, 0, 1, 1], [], []>} : vector<64x128xbf16>, vector<128x128xbf16>, vector<64x128xf32> -> vector<64x128xf32>
    %c0_17 = arith.constant 0 : index
    %c0_18 = arith.constant 0 : index
    %32 = vector.load %arg10[%c0_17, %c0_18] : memref<1x128xf32, #tpu.memory_space<vmem>>, vector<1x128xf32>
    %33 = vector.broadcast %32 : vector<1x128xf32> to vector<64x128xf32>
    %34 = arith.addf %31, %33 : vector<64x128xf32>
    %35 = arith.negf %34 : vector<64x128xf32>
    %36 = math.exp %35 : vector<64x128xf32>
    %cst_19 = arith.constant 1.000000e+00 : f32
    %37 = vector.broadcast %cst_19 : f32 to vector<64x128xf32>
    %38 = arith.addf %37, %36 : vector<64x128xf32>
    %39 = arith.divf %37, %38 : vector<64x128xf32>
    %40 = arith.mulf %34, %39 : vector<64x128xf32>
    %c0_20 = arith.constant 0 : index
    %c0_21 = arith.constant 0 : index
    %41 = vector.load %arg11[%c0_20, %c0_21] : memref<1x128xf32, #tpu.memory_space<vmem>>, vector<1x128xf32>
    %42 = vector.broadcast %41 : vector<1x128xf32> to vector<64x128xf32>
    %43 = arith.mulf %40, %42 : vector<64x128xf32>
    %cst_22 = arith.constant dense<0.000000e+00> : vector<64xf32>
    %44 = vector.multi_reduction <add>, %43, %cst_22 [1] : vector<64x128xf32> to vector<64xf32>
    %45 = vector.shape_cast %44 : vector<64xf32> to vector<64x1xf32>
    %c0_23 = arith.constant 0 : index
    %c0_24 = arith.constant 0 : index
    %46 = vector.load %arg12[%c0_23, %c0_24] : memref<1x1xf32, #tpu.memory_space<vmem>>, vector<1x1xf32>
    %47 = vector.broadcast %46 : vector<1x1xf32> to vector<64x1xf32>
    %48 = arith.addf %45, %47 : vector<64x1xf32>
    %49 = arith.negf %48 : vector<64x1xf32>
    %50 = math.exp %49 : vector<64x1xf32>
    %cst_25 = arith.constant 1.000000e+00 : f32
    %51 = vector.broadcast %cst_25 : f32 to vector<64x1xf32>
    %52 = arith.addf %51, %50 : vector<64x1xf32>
    %53 = arith.divf %51, %52 : vector<64x1xf32>
    %54 = vector.broadcast %53 : vector<64x1xf32> to vector<64x128xf32>
    %55 = arith.mulf %40, %54 : vector<64x128xf32>
    %56 = tpu.iota {dimensions = array<i32: 0>} : vector<16x64xi32>
    %c0_26 = arith.constant 0 : index
    %c0_27 = arith.constant 0 : index
    %57 = vector.load %arg4[%c0_26, %c0_27] : memref<1x64xi32, #tpu.memory_space<vmem>>, vector<1x64xi32>
    %58 = vector.broadcast %57 : vector<1x64xi32> to vector<16x64xi32>
    %59 = arith.cmpi eq, %56, %58 : vector<16x64xi32>
    %60 = arith.extui %59 : vector<16x64xi1> to vector<16x64xi32>
    %61 = arith.sitofp %60 : vector<16x64xi32> to vector<16x64xf32>
    %62 = arith.truncf %61 : vector<16x64xf32> to vector<16x64xbf16>
    %c0_28 = arith.constant 0 : index
    %c0_29 = arith.constant 0 : index
    %63 = vector.load %arg13[%c0_28, %c0_29] : memref<16x128xf32, #tpu.memory_space<vmem>>, vector<16x128xf32>
    %64 = arith.truncf %55 : vector<64x128xf32> to vector<64x128xbf16>
    %cst_30 = arith.constant dense<0.000000e+00> : vector<16x128xf32>
    %65 = tpu.matmul %62, %64, %cst_30 {dimension_numbers = #tpu.dot_dimension_numbers<[1], [0], [0], [1], [0, 0, 1, 1], [], []>} : vector<16x64xbf16>, vector<64x128xbf16>, vector<16x128xf32> -> vector<16x128xf32>
    %66 = arith.addf %63, %65 : vector<16x128xf32>
    %c0_31 = arith.constant 0 : index
    %c0_32 = arith.constant 0 : index
    %67 = vector.load %arg13[%c0_31, %c0_32] : memref<16x128xf32, #tpu.memory_space<vmem>>, vector<16x128xf32>
    tpu.vector_store %arg13[%c0_31, %c0_32], %66 {strides = array<i32>} : memref<16x128xf32, #tpu.memory_space<vmem>>, vector<16x128xf32>,
    return
  }
  func.func @transform_0(%arg0: i32, %arg1: i32) -> (i32, i32) {
    %c1_i32 = arith.constant 1 : i32
    %0 = arith.muli %arg0, %c1_i32 : i32
    %1 = arith.addi %0, %arg1 : i32
    %c0_i32 = arith.constant 0 : i32
    %c0_i32_0 = arith.constant 0 : i32
    return %1, %c0_i32 : i32, i32
  }
  func.func @transform_1(%arg0: i32, %arg1: i32) -> (i32, i32) {
    %c1_i32 = arith.constant 1 : i32
    %0 = arith.muli %arg0, %c1_i32 : i32
    %1 = arith.addi %0, %arg1 : i32
    %c0_i32 = arith.constant 0 : i32
    %c0_i32_0 = arith.constant 0 : i32
    return %1, %c0_i32 : i32, i32
  }
  func.func @transform_2(%arg0: i32, %arg1: i32) -> (i32, i32) {
    %c1_i32 = arith.constant 1 : i32
    %0 = arith.muli %arg0, %c1_i32 : i32
    %1 = arith.addi %0, %arg1 : i32
    %c0_i32 = arith.constant 0 : i32
    %c0_i32_0 = arith.constant 0 : i32
    return %c0_i32, %1 : i32, i32
  }
  func.func @transform_3(%arg0: i32, %arg1: i32) -> (i32, i32) {
    %c1_i32 = arith.constant 1 : i32
    %0 = arith.muli %arg0, %c1_i32 : i32
    %1 = arith.addi %0, %arg1 : i32
    %c0_i32 = arith.constant 0 : i32
    %c0_i32_0 = arith.constant 0 : i32
    return %1, %c0_i32 : i32, i32
  }
  func.func @transform_4(%arg0: i32, %arg1: i32) -> (i32, i32) {
    %c0_i32 = arith.constant 0 : i32
    %c0_i32_0 = arith.constant 0 : i32
    %c0_i32_1 = arith.constant 0 : i32
    return %c0_i32, %c0_i32_0 : i32, i32
  }
  func.func @transform_5(%arg0: i32, %arg1: i32) -> (i32, i32) {
    %c0_i32 = arith.constant 0 : i32
    %c0_i32_0 = arith.constant 0 : i32
    %c0_i32_1 = arith.constant 0 : i32
    return %c0_i32, %c0_i32_0 : i32, i32
  }
  func.func @transform_6(%arg0: i32, %arg1: i32) -> (i32, i32) {
    %c0_i32 = arith.constant 0 : i32
    %c0_i32_0 = arith.constant 0 : i32
    %c0_i32_1 = arith.constant 0 : i32
    return %c0_i32, %c0_i32_0 : i32, i32
  }
  func.func @transform_7(%arg0: i32, %arg1: i32) -> (i32, i32) {
    %c0_i32 = arith.constant 0 : i32
    %c0_i32_0 = arith.constant 0 : i32
    %c0_i32_1 = arith.constant 0 : i32
    return %c0_i32, %c0_i32_0 : i32, i32
  }
  func.func @transform_8(%arg0: i32, %arg1: i32) -> (i32, i32) {
    %c0_i32 = arith.constant 0 : i32
    %c0_i32_0 = arith.constant 0 : i32
    %c0_i32_1 = arith.constant 0 : i32
    return %c0_i32, %c0_i32_0 : i32, i32
  }
  func.func @transform_9(%arg0: i32, %arg1: i32) -> (i32, i32) {
    %c0_i32 = arith.constant 0 : i32
    %c0_i32_0 = arith.constant 0 : i32
    %c0_i32_1 = arith.constant 0 : i32
    return %c0_i32, %c0_i32_0 : i32, i32
  }
  func.func @transform_10(%arg0: i32, %arg1: i32) -> (i32, i32) {
    %c0_i32 = arith.constant 0 : i32
    %c0_i32_0 = arith.constant 0 : i32
    %c0_i32_1 = arith.constant 0 : i32
    return %c0_i32, %c0_i32_0 : i32, i32
  }
  func.func @transform_11(%arg0: i32, %arg1: i32) -> (i32, i32) {
    %c0_i32 = arith.constant 0 : i32
    %c0_i32_0 = arith.constant 0 : i32
    return %arg0, %c0_i32 : i32, i32
  }
}

module attributes {stable_mosaic.version = 11 : i64} {
  func.func @_message_kernel(%arg0: i32, %arg1: i32, %arg2: memref<64x1xi32, #tpu.memory_space<vmem>>, %arg3: memref<64x1xi32, #tpu.memory_space<vmem>>, %arg4: memref<1x64xi32, #tpu.memory_space<vmem>>, %arg5: memref<64x8xbf16, #tpu.memory_space<vmem>>, %arg6: memref<32x128xbf16, #tpu.memory_space<vmem>>, %arg7: memref<8x128xbf16, #tpu.memory_space<vmem>>, %arg8: memref<1x128xf32, #tpu.memory_space<vmem>>, %arg9: memref<128x128xbf16, #tpu.memory_space<vmem>>, %arg10: memref<1x128xf32, #tpu.memory_space<vmem>>, %arg11: memref<1x128xf32, #tpu.memory_space<vmem>>, %arg12: memref<1x1xf32, #tpu.memory_space<vmem>>, %arg13: memref<16x128xf32, #tpu.memory_space<vmem>>) attributes {dimension_semantics = [#tpu.dimension_semantics<parallel>, #tpu.dimension_semantics<arbitrary>], iteration_bounds = array<i64: 1, 1>, scalar_prefetch = 0 : i64, scratch_operands = 0 : i64, tpu.core_type = #tpu.core_type<tc>, window_params = [{transform_indices = @transform_0, window_bounds = array<i64: 64, 1>}, {transform_indices = @transform_1, window_bounds = array<i64: 64, 1>}, {transform_indices = @transform_2, window_bounds = array<i64: 1, 64>}, {transform_indices = @transform_3, window_bounds = array<i64: 64, 8>}, {pipeline_mode = #tpu.pipeline_mode<synchronous>, transform_indices = @transform_4, window_bounds = array<i64: 32, 128>}, {pipeline_mode = #tpu.pipeline_mode<synchronous>, transform_indices = @transform_5, window_bounds = array<i64: 8, 128>}, {pipeline_mode = #tpu.pipeline_mode<synchronous>, transform_indices = @transform_6, window_bounds = array<i64: 1, 128>}, {pipeline_mode = #tpu.pipeline_mode<synchronous>, transform_indices = @transform_7, window_bounds = array<i64: 128, 128>}, {pipeline_mode = #tpu.pipeline_mode<synchronous>, transform_indices = @transform_8, window_bounds = array<i64: 1, 128>}, {pipeline_mode = #tpu.pipeline_mode<synchronous>, transform_indices = @transform_9, window_bounds = array<i64: 1, 128>}, {pipeline_mode = #tpu.pipeline_mode<synchronous>, transform_indices = @transform_10, window_bounds = array<i64: 1, 1>}, {transform_indices = @transform_11, window_bounds = array<i64: 16, 128>}]} {
    %c0_i32 = arith.constant 0 : i32
    %0 = arith.cmpi eq, %arg1, %c0_i32 : i32
    %1 = arith.extui %0 : i1 to i32
    %c0_i32_0 = arith.constant 0 : i32
    %2 = arith.cmpi ne, %1, %c0_i32_0 : i32
    scf.if %2 {
      %cst_33 = arith.constant 0.000000e+00 : f32
      %68 = vector.broadcast %cst_33 : f32 to vector<16x128xf32>
      %c0_34 = arith.constant 0 : index
      %c0_35 = arith.constant 0 : index
      %69 = vector.load %arg13[%c0_34, %c0_35] : memref<16x128xf32, #tpu.memory_space<vmem>>, vector<16x128xf32>
      tpu.vector_store %arg13[%c0_34, %c0_35], %68 {strides = array<i32>} : memref<16x128xf32, #tpu.memory_space<vmem>>, vector<16x128xf32>,
    } else {
    }
    %3 = tpu.iota {dimensions = array<i32: 1>} : vector<64x32xi32>
    %c0 = arith.constant 0 : index
    %c0_1 = arith.constant 0 : index
    %4 = vector.load %arg2[%c0, %c0_1] : memref<64x1xi32, #tpu.memory_space<vmem>>, vector<64x1xi32>
    %5 = vector.broadcast %4 : vector<64x1xi32> to vector<64x32xi32>
    %6 = arith.cmpi eq, %3, %5 : vector<64x32xi32>
    %c0_2 = arith.constant 0 : index
    %c0_3 = arith.constant 0 : index
    %7 = vector.load %arg3[%c0_2, %c0_3] : memref<64x1xi32, #tpu.memory_space<vmem>>, vector<64x1xi32>
    %8 = vector.broadcast %7 : vector<64x1xi32> to vector<64x32xi32>
    %9 = arith.cmpi eq, %3, %8 : vector<64x32xi32>
    %10 = arith.ori %6, %9 : vector<64x32xi1>
    %11 = arith.extui %10 : vector<64x32xi1> to vector<64x32xi32>
    %12 = arith.sitofp %11 : vector<64x32xi32> to vector<64x32xf32>
    %13 = arith.truncf %12 : vector<64x32xf32> to vector<64x32xbf16>
    %c0_4 = arith.constant 0 : index
    %c0_5 = arith.constant 0 : index
    %14 = vector.load %arg6[%c0_4, %c0_5] : memref<32x128xbf16, #tpu.memory_space<vmem>>, vector<32x128xbf16>
    %cst = arith.constant dense<0.000000e+00> : vector<64x128xf32>
    %15 = tpu.matmul %13, %14, %cst {dimension_numbers = #tpu.dot_dimension_numbers<[1], [0], [0], [1], [0, 0, 1, 1], [], []>} : vector<64x32xbf16>, vector<32x128xbf16>, vector<64x128xf32> -> vector<64x128xf32>
    %c0_6 = arith.constant 0 : index
    %c0_7 = arith.constant 0 : index
    %16 = vector.load %arg5[%c0_6, %c0_7] : memref<64x8xbf16, #tpu.memory_space<vmem>>, vector<64x8xbf16>
    %c0_8 = arith.constant 0 : index
    %c0_9 = arith.constant 0 : index
    %17 = vector.load %arg7[%c0_8, %c0_9] : memref<8x128xbf16, #tpu.memory_space<vmem>>, vector<8x128xbf16>
    %cst_10 = arith.constant dense<0.000000e+00> : vector<64x128xf32>
    %18 = tpu.matmul %16, %17, %cst_10 {dimension_numbers = #tpu.dot_dimension_numbers<[1], [0], [0], [1], [0, 0, 1, 1], [], []>} : vector<64x8xbf16>, vector<8x128xbf16>, vector<64x128xf32> -> vector<64x128xf32>
    %19 = arith.addf %15, %18 : vector<64x128xf32>
    %c0_11 = arith.constant 0 : index
    %c0_12 = arith.constant 0 : index
    %20 = vector.load %arg8[%c0_11, %c0_12] : memref<1x128xf32, #tpu.memory_space<vmem>>, vector<1x128xf32>
    %21 = vector.broadcast %20 : vector<1x128xf32> to vector<64x128xf32>
    %22 = arith.addf %19, %21 : vector<64x128xf32>
    %23 = arith.negf %22 : vector<64x128xf32>
    %24 = math.exp %23 : vector<64x128xf32>
    %cst_13 = arith.constant 1.000000e+00 : f32
    %25 = vector.broadcast %cst_13 : f32 to vector<64x128xf32>
    %26 = arith.addf %25, %24 : vector<64x128xf32>
    %27 = arith.divf %25, %26 : vector<64x128xf32>
    %28 = arith.mulf %22, %27 : vector<64x128xf32>
    %29 = arith.truncf %28 : vector<64x128xf32> to vector<64x128xbf16>
    %c0_14 = arith.constant 0 : index
    %c0_15 = arith.constant 0 : index
    %30 = vector.load %arg9[%c0_14, %c0_15] : memref<128x128xbf16, #tpu.memory_space<vmem>>, vector<128x128xbf16>
    %cst_16 = arith.constant dense<0.000000e+00> : vector<64x128xf32>
    %31 = tpu.matmul %29, %30, %cst_16 {dimension_numbers = #tpu.dot_dimension_numbers<[1], [0], [0], [1], [0, 0, 1, 1], [], []>} : vector<64x128xbf16>, vector<128x128xbf16>, vector<64x128xf32> -> vector<64x128xf32>
    %c0_17 = arith.constant 0 : index
    %c0_18 = arith.constant 0 : index
    %32 = vector.load %arg10[%c0_17, %c0_18] : memref<1x128xf32, #tpu.memory_space<vmem>>, vector<1x128xf32>
    %33 = vector.broadcast %32 : vector<1x128xf32> to vector<64x128xf32>
    %34 = arith.addf %31, %33 : vector<64x128xf32>
    %35 = arith.negf %34 : vector<64x128xf32>
    %36 = math.exp %35 : vector<64x128xf32>
    %cst_19 = arith.constant 1.000000e+00 : f32
    %37 = vector.broadcast %cst_19 : f32 to vector<64x128xf32>
    %38 = arith.addf %37, %36 : vector<64x128xf32>
    %39 = arith.divf %37, %38 : vector<64x128xf32>
    %40 = arith.mulf %34, %39 : vector<64x128xf32>
    %c0_20 = arith.constant 0 : index
    %c0_21 = arith.constant 0 : index
    %41 = vector.load %arg11[%c0_20, %c0_21] : memref<1x128xf32, #tpu.memory_space<vmem>>, vector<1x128xf32>
    %42 = vector.broadcast %41 : vector<1x128xf32> to vector<64x128xf32>
    %43 = arith.mulf %40, %42 : vector<64x128xf32>
    %cst_22 = arith.constant dense<0.000000e+00> : vector<64xf32>
    %44 = vector.multi_reduction <add>, %43, %cst_22 [1] : vector<64x128xf32> to vector<64xf32>
    %45 = vector.shape_cast %44 : vector<64xf32> to vector<64x1xf32>
    %c0_23 = arith.constant 0 : index
    %c0_24 = arith.constant 0 : index
    %46 = vector.load %arg12[%c0_23, %c0_24] : memref<1x1xf32, #tpu.memory_space<vmem>>, vector<1x1xf32>
    %47 = vector.broadcast %46 : vector<1x1xf32> to vector<64x1xf32>
    %48 = arith.addf %45, %47 : vector<64x1xf32>
    %49 = arith.negf %48 : vector<64x1xf32>
    %50 = math.exp %49 : vector<64x1xf32>
    %cst_25 = arith.constant 1.000000e+00 : f32
    %51 = vector.broadcast %cst_25 : f32 to vector<64x1xf32>
    %52 = arith.addf %51, %50 : vector<64x1xf32>
    %53 = arith.divf %51, %52 : vector<64x1xf32>
    %54 = vector.broadcast %53 : vector<64x1xf32> to vector<64x128xf32>
    %55 = arith.mulf %40, %54 : vector<64x128xf32>
    %56 = tpu.iota {dimensions = array<i32: 0>} : vector<16x64xi32>
    %c0_26 = arith.constant 0 : index
    %c0_27 = arith.constant 0 : index
    %57 = vector.load %arg4[%c0_26, %c0_27] : memref<1x64xi32, #tpu.memory_space<vmem>>, vector<1x64xi32>
    %58 = vector.broadcast %57 : vector<1x64xi32> to vector<16x64xi32>
    %59 = arith.cmpi eq, %56, %58 : vector<16x64xi32>
    %60 = arith.extui %59 : vector<16x64xi1> to vector<16x64xi32>
    %61 = arith.sitofp %60 : vector<16x64xi32> to vector<16x64xf32>
    %62 = arith.truncf %61 : vector<16x64xf32> to vector<16x64xbf16>
    %c0_28 = arith.constant 0 : index
    %c0_29 = arith.constant 0 : index
    %63 = vector.load %arg13[%c0_28, %c0_29] : memref<16x128xf32, #tpu.memory_space<vmem>>, vector<16x128xf32>
    %64 = arith.truncf %55 : vector<64x128xf32> to vector<64x128xbf16>
    %cst_30 = arith.constant dense<0.000000e+00> : vector<16x128xf32>
    %65 = tpu.matmul %62, %64, %cst_30 {dimension_numbers = #tpu.dot_dimension_numbers<[1], [0], [0], [1], [0, 0, 1, 1], [], []>} : vector<16x64xbf16>, vector<64x128xbf16>, vector<16x128xf32> -> vector<16x128xf32>
    %66 = arith.addf %63, %65 : vector<16x128xf32>
    %c0_31 = arith.constant 0 : index
    %c0_32 = arith.constant 0 : index
    %67 = vector.load %arg13[%c0_31, %c0_32] : memref<16x128xf32, #tpu.memory_space<vmem>>, vector<16x128xf32>
    tpu.vector_store %arg13[%c0_31, %c0_32], %66 {strides = array<i32>} : memref<16x128xf32, #tpu.memory_space<vmem>>, vector<16x128xf32>,
    return
  }
  func.func @transform_0(%arg0: i32, %arg1: i32) -> (i32, i32) {
    %c1_i32 = arith.constant 1 : i32
    %0 = arith.muli %arg0, %c1_i32 : i32
    %1 = arith.addi %0, %arg1 : i32
    %c0_i32 = arith.constant 0 : i32
    %c0_i32_0 = arith.constant 0 : i32
    return %1, %c0_i32 : i32, i32
  }
  func.func @transform_1(%arg0: i32, %arg1: i32) -> (i32, i32) {
    %c1_i32 = arith.constant 1 : i32
    %0 = arith.muli %arg0, %c1_i32 : i32
    %1 = arith.addi %0, %arg1 : i32
    %c0_i32 = arith.constant 0 : i32
    %c0_i32_0 = arith.constant 0 : i32
    return %1, %c0_i32 : i32, i32
  }
  func.func @transform_2(%arg0: i32, %arg1: i32) -> (i32, i32) {
    %c1_i32 = arith.constant 1 : i32
    %0 = arith.muli %arg0, %c1_i32 : i32
    %1 = arith.addi %0, %arg1 : i32
    %c0_i32 = arith.constant 0 : i32
    %c0_i32_0 = arith.constant 0 : i32
    return %c0_i32, %1 : i32, i32
  }
  func.func @transform_3(%arg0: i32, %arg1: i32) -> (i32, i32) {
    %c1_i32 = arith.constant 1 : i32
    %0 = arith.muli %arg0, %c1_i32 : i32
    %1 = arith.addi %0, %arg1 : i32
    %c0_i32 = arith.constant 0 : i32
    %c0_i32_0 = arith.constant 0 : i32
    return %1, %c0_i32 : i32, i32
  }
  func.func @transform_4(%arg0: i32, %arg1: i32) -> (i32, i32) {
    %c0_i32 = arith.constant 0 : i32
    %c0_i32_0 = arith.constant 0 : i32
    %c0_i32_1 = arith.constant 0 : i32
    return %c0_i32, %c0_i32_0 : i32, i32
  }
  func.func @transform_5(%arg0: i32, %arg1: i32) -> (i32, i32) {
    %c0_i32 = arith.constant 0 : i32
    %c0_i32_0 = arith.constant 0 : i32
    %c0_i32_1 = arith.constant 0 : i32
    return %c0_i32, %c0_i32_0 : i32, i32
  }
  func.func @transform_6(%arg0: i32, %arg1: i32) -> (i32, i32) {
    %c0_i32 = arith.constant 0 : i32
    %c0_i32_0 = arith.constant 0 : i32
    %c0_i32_1 = arith.constant 0 : i32
    return %c0_i32, %c0_i32_0 : i32, i32
  }
  func.func @transform_7(%arg0: i32, %arg1: i32) -> (i32, i32) {
    %c0_i32 = arith.constant 0 : i32
    %c0_i32_0 = arith.constant 0 : i32
    %c0_i32_1 = arith.constant 0 : i32
    return %c0_i32, %c0_i32_0 : i32, i32
  }
  func.func @transform_8(%arg0: i32, %arg1: i32) -> (i32, i32) {
    %c0_i32 = arith.constant 0 : i32
    %c0_i32_0 = arith.constant 0 : i32
    %c0_i32_1 = arith.constant 0 : i32
    return %c0_i32, %c0_i32_0 : i32, i32
  }
  func.func @transform_9(%arg0: i32, %arg1: i32) -> (i32, i32) {
    %c0_i32 = arith.constant 0 : i32
    %c0_i32_0 = arith.constant 0 : i32
    %c0_i32_1 = arith.constant 0 : i32
    return %c0_i32, %c0_i32_0 : i32, i32
  }
  func.func @transform_10(%arg0: i32, %arg1: i32) -> (i32, i32) {
    %c0_i32 = arith.constant 0 : i32
    %c0_i32_0 = arith.constant 0 : i32
    %c0_i32_1 = arith.constant 0 : i32
    return %c0_i32, %c0_i32_0 : i32, i32
  }
  func.func @transform_11(%arg0: i32, %arg1: i32) -> (i32, i32) {
    %c0_i32 = arith.constant 0 : i32
    %c0_i32_0 = arith.constant 0 : i32
    return %arg0, %c0_i32 : i32, i32
  }
}

</mosaic_0001>

<bundles_post_ra>
// kernel: tpu_custom_call.1
= control target key start
LH: loop header
LB: loop body
LE: loop exit
PB: predicated region body
PF: predicated region fallthrough
CT: control target
= control target key end

     0   :  { %s1502_s0 = inlined_call_operand.vmem [shape: s32[64,1], index: 0, kind: input, shape index: {}]   ;;  %s1503_s1 = inlined_call_operand.vmem [shape: s32[64,1], index: 1, kind: input, shape index: {}]   ;;  %s1504_s2 = inlined_call_operand.vmem [shape: s32[1,64], index: 2, kind: input, shape index: {}]   ;;  %s1505_s3 = inlined_call_operand.vmem [shape: bf16[64,8], index: 3, kind: input, shape index: {}]   ;;  %s1506_s4 = inlined_call_operand.vmem [shape: bf16[32,128], index: 4, kind: input, shape index: {}]   ;;  %s1507_s5 = inlined_call_operand.vmem [shape: bf16[8,128], index: 5, kind: input, shape index: {}]   ;;  %s1508_s6 = inlined_call_operand.vmem [shape: f32[1,128], index: 6, kind: input, shape index: {}]   ;;  %s1509_s7 = inlined_call_operand.vmem [shape: bf16[128,128], index: 7, kind: input, shape index: {}]   ;;  %s1510_s8 = inlined_call_operand.vmem [shape: f32[1,128], index: 8, kind: input, shape index: {}]   ;;  %s1511_s9 = inlined_call_operand.vmem [shape: f32[1,128], index: 9, kind: input, shape index: {}]   ;;  %s1512_s10 = inlined_call_operand.<no memory space> [shape: f32[1,1], index: 10, kind: input, shape index: {}]   ;;  %s1513_s11 = inlined_call_operand.hbm [shape: f32[16,128], index: 11, kind: output, shape index: {}]  }
   0x1   :  { %v16_v0 = vstv %s1512_s10 }
   0x2   :  { %17 = vst [vmem:[#allocation2] sm:$0x1] %v16_v0 }
   0x3   :  { %v170_v1 = vld [vmem:[%s1503_s1] sm:$0xff]  ;;  %v1248_v3 = vmov 0   ;;  %v171_v4 = vld [vmem:[%s1503_s1 + $0x8] sm:$0xff]  ;;  %vm284_vm0 = vcmask 1043456   ;;  %v133_v6 = vld [vmem:[%s1502_s0 + $0x18] sm:$0xff]  ;;  %vm271_vm1 = vcmask 64512  }
   0x4   :  { %v130_v2 = vld [vmem:[%s1502_s0] sm:$0xff]  ;;  %1115 = vset.pattern.permute.xlu1 %v1248_v3  ;;  %1114 = vset.pattern.permute.xlu0 %v1248_v3  ;;  %v131_v5 = vld [vmem:[%s1502_s0 + $0x8] sm:$0xff]  ;;  %v132_v7 = vld [vmem:[%s1502_s0 + $0x10] sm:$0xff] }
   0x5   :  { %179 = vperm.xlu1 %1115, %v170_v1   ;;  %139 = vperm.xlu0 %1114, %v130_v2   ;;  %v250_v8 = vld [vmem:[%s1507_s5] sm:$0xf]  ;;  %v1117_v11 = vld [vmem:[%s1505_s3 + $0x8] sm:$0xff]   ;;  %v1118_v12 = vld [vmem:[%s1505_s3 + $0x10] sm:$0xff]  }
   0x6   :  { %v286_v9 = vsel %vm284_vm0, %v250_v8, 0  ;;  %v1116_v10 = vld [vmem:[%s1505_s3] sm:$0xff]   ;;  %1107 = vmatprep.subr.msk.bf16.mxu1 %vm284_vm0, %v250_v8  ;;  %v173_v13 = vld [vmem:[%s1503_s1 + $0x18] sm:$0xff]  ;;  %v172_v14 = vld [vmem:[%s1503_s1 + $0x10] sm:$0xff] }
   0x7   :  { %1050 = vmatpush3.bf16.msra.mxu1 %v286_v9  ;;  %1051 = vmatprep.mubr.msk.bf16.mxu1 %vm271_vm1, %v1116_v10  ;;  %v1120_v15 = vld [vmem:[%s1506_s4 + $0x8] sm:$0xff]   ;;  %v1121_v16 = vld [vmem:[%s1506_s4] sm:$0xff]   ;;  %v1119_v19 = vld [vmem:[%s1505_s3 + $0x18] sm:$0xff]  }
   0x8   :  { %1059 = vmatprep.subr.bf16.mxu1 %v1120_v15  ;;  %v135_v17 = vld [vmem:[%s1502_s0 + $0x28] sm:$0xff]  ;;  %v134_v18 = vld [vmem:[%s1502_s0 + $0x20] sm:$0xff] }
   0x9   :  { %182 = vperm.xlu1 %1115, %v171_v4   ;;  %142 = vperm.xlu0 %1114, %v131_v5  }
   0xa   :  { %1052 = vmatmul.mubr.msk.bf16.vlgmr.msra.gmra.mxu1 %vm271_vm1, %v1117_v11 }
   0xb   :  { %1055 = vmatprep.mubr.msk.bf16.mxu1 %vm271_vm1, %v1118_v12  ;;  %1060 = vmatpush3.bf16.msra.mxu1 %v1120_v15 }
   0xc   :  { %1061 = vmatprep.subr.bf16.mxu1 %v1121_v16 }
   0xd   :  { %148 = vperm.xlu1 %1115, %v133_v6   ;;  %145 = vperm.xlu0 %1114, %v132_v7  }
   0xf   :  { %1062 = vmatpush3.bf16.msra.mxu1 %v1121_v16 }
  0x11   :  { %188 = vperm.xlu1 %1115, %v173_v13   ;;  %185 = vperm.xlu0 %1114, %v172_v14  }
  0x12   :  { %18 = vsyncpa [#allocation4], 0  ;;  %v175_v20 = vld [vmem:[%s1503_s1 + $0x28] sm:$0xff]  ;;  %v174_v21 = vld [vmem:[%s1503_s1 + $0x20] sm:$0xff]  ;;  %1056 = vmatmul.mubr.msk.bf16.gmra.mxu1 %vm271_vm1, %v1119_v19  ;;  %v1249_v22 = vmov 0.0   ;;  %v128_v27 = vlaneseq  ;;  %vm365_vm8 = vcmask 261120  }
  0x13   :  { %1095 = vmatprep.subr.bf16.mxu1 %v1249_v22  ;;  %v137_v23 = vld [vmem:[%s1502_s0 + $0x38] sm:$0xff]  ;;  %v136_v24 = vld [vmem:[%s1502_s0 + $0x30] sm:$0xff]  ;;  %v1124_v59 = vld [vmem:[%s1509_s7 + $0x28] sm:$0xff]  }
  0x14   :  { %v177_v25 = vld [vmem:[%s1503_s1 + $0x38] sm:$0xff]  ;;  %v176_v26 = vld [vmem:[%s1503_s1 + $0x30] sm:$0xff]  ;;  %v129_v28 = vand.u32 127, %v128_v27  ;;  %v1125_v60 = vld [vmem:[%s1509_s7 + $0x20] sm:$0xff]  }
  0x15   :  { %154 = vperm.xlu1 %1115, %v135_v17   ;;  %151 = vperm.xlu0 %1114, %v134_v18   ;;  %v1122_v57 = vld [vmem:[%s1509_s7 + $0x38] sm:$0xff]   ;;  %v1123_v58 = vld [vmem:[%s1509_s7 + $0x30] sm:$0xff]   ;;  %v1128_v63 = vld [vmem:[%s1509_s7 + $0x8] sm:$0xff]  }
  0x16   :  { %1071 = vmatprep.subr.bf16.mxu0 %v1122_v57  ;;  %v1126_v61 = vld [vmem:[%s1509_s7 + $0x18] sm:$0xff]   ;;  %v1127_v62 = vld [vmem:[%s1509_s7 + $0x10] sm:$0xff]   ;;  %v1129_v0 = vld [vmem:[%s1509_s7] sm:$0xff]  }
  0x17   :  { %1072 = vmatpush3.bf16.msra.mxu0 %v1122_v57  ;;  %v981_v10 = vld [vmem:[%s1508_s6] ss:$0 sm:$0xff] }
  0x18   :  { %1073 = vmatprep.subr.bf16.mxu0 %v1123_v58 }
  0x19   :  { %194 = vperm.xlu1 %1115, %v175_v20   ;;  %191 = vperm.xlu0 %1114, %v174_v21  }
  0x1b   :  { %1074 = vmatpush3.bf16.msra.mxu0 %v1123_v58 }
  0x1c   :  { %1075 = vmatprep.subr.bf16.mxu0 %v1124_v59 }
  0x1d   :  { %160 = vperm.xlu1 %1115, %v137_v23   ;;  %157 = vperm.xlu0 %1114, %v136_v24  }
  0x1f   :  { %1076 = vmatpush3.bf16.msra.mxu0 %v1124_v59 }
  0x20   :  { %1077 = vmatprep.subr.bf16.mxu0 %v1125_v60 }
  0x21   :  { %200 = vperm.xlu1 %1115, %v177_v25   ;;  %197 = vperm.xlu0 %1114, %v176_v26  }
  0x23   :  { %1078 = vmatpush3.bf16.msra.mxu0 %v1125_v60 }
  0x24   :  { %1079 = vmatprep.subr.bf16.mxu0 %v1126_v61 }
  0x27   :  { %1080 = vmatpush3.bf16.msra.mxu0 %v1126_v61 }
  0x28   :  { %1081 = vmatprep.subr.bf16.mxu0 %v1127_v62 }
  0x2b   :  { %1082 = vmatpush3.bf16.msra.mxu0 %v1127_v62 }
  0x2c   :  { %1083 = vmatprep.subr.bf16.mxu0 %v1128_v63 }
  0x2f   :  { %1084 = vmatpush3.bf16.msra.mxu0 %v1128_v63 }
  0x30   :  { %1085 = vmatprep.subr.bf16.mxu0 %v1129_v0 }
  0x33   :  { %1086 = vmatpush3.bf16.msra.mxu0 %v1129_v0 }
  0x80   :  { %v180_v29 = vpop.permute.xlu1 %179  ;;  %v140_v30 = vpop.permute.xlu0 %139 }
  0x81   :  { %vm202_vm2 = vcmp.eq.s32.totalorder %v129_v28, %v180_v29  ;;  %vm162_vm3 = vcmp.eq.s32.totalorder %v129_v28, %v140_v30 }
  0x82   :  { %vm210_vm4 = vmor %vm162_vm3, %vm202_vm2 }
  0x83   :  { %v959_v33 = vsel %vm210_vm4, 1.0, %v1249_v22 }
  0x84   :  { %v183_v31 = vpop.permute.xlu1 %182  ;;  %v143_v32 = vpop.permute.xlu0 %142 }
  0x85   :  { %vm203_vm5 = vcmp.eq.s32.totalorder %v129_v28, %v183_v31  ;;  %vm163_vm6 = vcmp.eq.s32.totalorder %v129_v28, %v143_v32 }
  0x86   :  { %vm211_vm7 = vmor %vm163_vm6, %vm203_vm5 }
  0x87   :  { %v960_v34 = vsel %vm211_vm7, 1.0, %v1249_v22 }
  0x88   :  { %v234_v35 = vpack.c.bf16 %v960_v34, %v959_v33  ;;  %v149_v36 = vpop.permute.xlu1 %148  ;;  %v146_v37 = vpop.permute.xlu0 %145 }
  0x89   :  { %vm165_vm9 = vcmp.eq.s32.totalorder %v129_v28, %v149_v36  ;;  %vm164_vm12 = vcmp.eq.s32.totalorder %v129_v28, %v146_v37 }
  0x8a   :  { %1063 = vmatprep.mubr.msk.bf16.mxu1 %vm365_vm8, %v234_v35 }
  0x8c   :  { %v189_v38 = vpop.permute.xlu1 %188  ;;  %v186_v39 = vpop.permute.xlu0 %185 }
  0x8d   :  { %vm205_vm10 = vcmp.eq.s32.totalorder %v129_v28, %v189_v38  ;;  %vm204_vm11 = vcmp.eq.s32.totalorder %v129_v28, %v186_v39 }
  0x8e   :  { %vm213_vm13 = vmor %vm165_vm9, %vm205_vm10 }
  0x8f   :  { %v962_v40 = vsel %vm213_vm13, 1.0, %v1249_v22  ;;  %vm212_vm14 = vmor %vm164_vm12, %vm204_vm11 }
  0x90   :  { %v961_v41 = vsel %vm212_vm14, 1.0, %v1249_v22  ;;  %v155_v42 = vpop.permute.xlu1 %154  ;;  %v152_v43 = vpop.permute.xlu0 %151  ;;  %vm873_vm14 = vcmask 523264  }
  0x91   :  { %v235_v44 = vpack.c.bf16 %v962_v40, %v961_v41  ;;  %vm167_vm15 = vcmp.eq.s32.totalorder %v129_v28, %v155_v42  ;;  %vm166_vm2 = vcmp.eq.s32.totalorder %v129_v28, %v152_v43 }
  0x93   :  { %1064 = vmatmul.mubr.msk.bf16.vlgmr.msra.gmra.mxu1 %vm365_vm8, %v235_v44 }
  0x94   :  { %v195_v45 = vpop.permute.xlu1 %194  ;;  %v192_v46 = vpop.permute.xlu0 %191 }
  0x95   :  { %vm207_vm0 = vcmp.eq.s32.totalorder %v129_v28, %v195_v45  ;;  %vm206_vm1 = vcmp.eq.s32.totalorder %v129_v28, %v192_v46 }
  0x96   :  { %vm215_vm3 = vmor %vm167_vm15, %vm207_vm0 }
  0x97   :  { %v964_v47 = vsel %vm215_vm3, 1.0, %v1249_v22  ;;  %vm214_vm4 = vmor %vm166_vm2, %vm206_vm1 }
  0x98   :  { %v963_v48 = vsel %vm214_vm4, 1.0, %v1249_v22  ;;  %v161_v49 = vpop.permute.xlu1 %160  ;;  %v158_v50 = vpop.permute.xlu0 %157 }
  0x99   :  { %v236_v51 = vpack.c.bf16 %v964_v47, %v963_v48  ;;  %vm169_vm5 = vcmp.eq.s32.totalorder %v129_v28, %v161_v49  ;;  %vm168_vm9 = vcmp.eq.s32.totalorder %v129_v28, %v158_v50 }
  0x9b   :  { %1067 = vmatprep.mubr.msk.bf16.mxu1 %vm365_vm8, %v236_v51 }
  0x9c   :  { %v201_v52 = vpop.permute.xlu1 %200  ;;  %v198_v53 = vpop.permute.xlu0 %197 }
  0x9d   :  { %vm209_vm6 = vcmp.eq.s32.totalorder %v129_v28, %v201_v52  ;;  %vm208_vm7 = vcmp.eq.s32.totalorder %v129_v28, %v198_v53 }
  0x9e   :  { %vm217_vm10 = vmor %vm169_vm5, %vm209_vm6 }
  0x9f   :  { %v966_v54 = vsel %vm217_vm10, 1.0, %v1249_v22  ;;  %vm216_vm11 = vmor %vm168_vm9, %vm208_vm7 }
  0xa0   :  { %v965_v55 = vsel %vm216_vm11, 1.0, %v1249_v22 }
  0xa1   :  { %v237_v56 = vpack.c.bf16 %v966_v54, %v965_v55 }
  0xa3   :  { %1068 = vmatmul.mubr.msk.bf16.gmra.mxu1 %vm365_vm8, %v237_v56  ;;  %vm1250_vm8 = vmmov 0  }
  0xa4   :  { %1103 = vmatprep.mubr.msk.bf16.mxu1 %vm1250_vm8, %v1249_v22 }
  0xca   :  { %v1053_v1 = vpop.f32.mrf.mxu1 }
  0xcc   :  { %v322_v2 = vpop.f32.mrf.mxu1 }
  0xce   :  { %v1054_v3 = vpop.f32.mrf.mxu1 }
  0xd0   :  { %v325_v4 = vpop.f32.mrf.mxu1 }
  0xd2   :  { %v1057_v5 = vpop.f32.mrf.mxu1 }
  0xd4   :  { %v338_v6 = vpop.f32.mrf.mxu1 }
  0xd6   :  { %v1058_v7 = vpop.f32.mrf.mxu1 }
  0xd8   :  { %v341_v8 = vpop.f32.mrf.mxu1 }
 0x153   :  { %v1065_v9 = vpop.f32.mrf.mxu1 }
 0x154   :  { %v421_v11 = vadd.f32 %v1065_v9, %v1053_v1 }
 0x155   :  { %v412_v12 = vpop.f32.mrf.mxu1 }
 0x156   :  { %v1431_v13 = vadd.f32 %v981_v10, %v421_v11  ;;  %v413_v14 = vadd.f32 %v412_v12, %v322_v2 }
 0x157   :  { %v1066_v15 = vpop.f32.mrf.mxu1 }
 0x158   :  { %v984_v16 = vmul.f32 -1.442695, %v1431_v13  ;;  %v450_v17 = vadd.f32 %v981_v10, %v413_v14  ;;  %v424_v18 = vadd.f32 %v1066_v15, %v1054_v3 }
 0x159   :  { %v415_v19 = vpop.f32.mrf.mxu1 }
 0x15a   :  { %1130 = vpow2.f32 %v984_v16  ;;  %v982_v20 = vmul.f32 -1.442695, %v450_v17  ;;  %v453_v21 = vadd.f32 %v981_v10, %v424_v18  ;;  %v416_v23 = vadd.f32 %v415_v19, %v325_v4  ;;  %v990_v18 = vld [vmem:[%s1510_s8] ss:$0 sm:$0xff] }
 0x15c   :  { %1132 = vpow2.f32 %v982_v20  ;;  %v985_v24 = vmul.f32 -1.442695, %v453_v21  ;;  %v451_v25 = vadd.f32 %v981_v10, %v416_v23 }
 0x15e   :  { %1134 = vpow2.f32 %v985_v24  ;;  %v983_v26 = vmul.f32 -1.442695, %v451_v25 }
 0x160   :  { %1136 = vpow2.f32 %v983_v26 }
 0x163   :  { %v1069_v28 = vpop.f32.mrf.mxu1 }
 0x164   :  { %v437_v29 = vadd.f32 %v1069_v28, %v1057_v5 }
 0x165   :  { %v428_v30 = vpop.f32.mrf.mxu1 }
 0x166   :  { %v456_v31 = vadd.f32 %v981_v10, %v437_v29  ;;  %v429_v32 = vadd.f32 %v428_v30, %v338_v6 }
 0x167   :  { %v1131_v33 = vpop.eup %1130  ;;  %v1070_v34 = vpop.f32.mrf.mxu1 }
 0x168   :  { %v484_v35 = vadd.f32 1.0, %v1131_v33  ;;  %v988_v36 = vmul.f32 -1.442695, %v456_v31  ;;  %v454_v37 = vadd.f32 %v981_v10, %v429_v32  ;;  %v440_v38 = vadd.f32 %v1070_v34, %v1058_v7 }
 0x169   :  { %v1133_v39 = vpop.eup %1132  ;;  %v431_v40 = vpop.f32.mrf.mxu1 }
 0x16a   :  { %1138 = vrcp.f32 %v484_v35  ;;  %v482_v41 = vadd.f32 1.0, %v1133_v39  ;;  %v986_v42 = vmul.f32 -1.442695, %v454_v37  ;;  %v457_v43 = vadd.f32 %v981_v10, %v440_v38 }
 0x16b   :  { %v1135_v44 = vpop.eup %1134  ;;  %1140 = vpow2.f32 %v988_v36  ;;  %v432_v45 = vadd.f32 %v431_v40, %v341_v8 }
 0x16c   :  { %1142 = vrcp.f32 %v482_v41  ;;  %v485_v46 = vadd.f32 1.0, %v1135_v44  ;;  %v989_v47 = vmul.f32 -1.442695, %v457_v43 }
 0x16d   :  { %v1137_v48 = vpop.eup %1136  ;;  %1144 = vpow2.f32 %v986_v42  ;;  %v455_v49 = vadd.f32 %v981_v10, %v432_v45 }
 0x16e   :  { %1146 = vrcp.f32 %v485_v46  ;;  %v483_v50 = vadd.f32 1.0, %v1137_v48 }
 0x16f   :  { %1148 = vpow2.f32 %v989_v47  ;;  %v987_v51 = vmul.f32 -1.442695, %v455_v49 }
 0x170   :  { %1150 = vrcp.f32 %v483_v50 }
 0x171   :  { %1152 = vpow2.f32 %v987_v51 }
 0x177   :  { %v1139_v52 = vpop.eup %1138 }
 0x178   :  { %v1141_v53 = vpop.eup %1140  ;;  %v508_v2 = vmul.f32 %v1139_v52, %v1431_v13 }
 0x179   :  { %v1143_v54 = vpop.eup %1142  ;;  %v488_v59 = vadd.f32 1.0, %v1141_v53 }
 0x17a   :  { %v1145_v55 = vpop.eup %1144  ;;  %v506_v0 = vmul.f32 %v1143_v54, %v450_v17 }
 0x17b   :  { %v1147_v56 = vpop.eup %1146  ;;  %v486_v57 = vadd.f32 1.0, %v1145_v55 }
 0x17c   :  { %v1149_v58 = vpop.eup %1148  ;;  %v509_v61 = vmul.f32 %v1147_v56, %v453_v21 }
 0x17d   :  { %v1151_v60 = vpop.eup %1150  ;;  %v489_v62 = vadd.f32 1.0, %v1149_v58  ;;  %1154 = vrcp.f32 %v486_v57 }
 0x17e   :  { %v1153_v63 = vpop.eup %1152  ;;  %v507_v1 = vmul.f32 %v1151_v60, %v451_v25  ;;  %v515_v5 = vpack.c.bf16 %v509_v61, %v508_v2 }
 0x17f   :  { %1156 = vrcp.f32 %v489_v62  ;;  %v487_v3 = vadd.f32 1.0, %v1153_v63  ;;  %v1007_v62 = vld [vmem:[%s1511_s9] ss:$0 sm:$0xff] }
 0x180   :  { %1158 = vrcp.f32 %v488_v59  ;;  %v514_v4 = vpack.c.bf16 %v507_v1, %v506_v0 }
 0x181   :  { %1160 = vrcp.f32 %v487_v3 }
 0x182   :  { %1087 = vmatprep.mubr.bf16.mxu0 %v514_v4 }
 0x183   :  { %1088 = vmatmul.mubr.bf16.vlgmr.msra.gmra.mxu0 %v515_v5 }
 0x18a   :  { %v1155_v6 = vpop.eup %1154 }
 0x18b   :  { %v510_v11 = vmul.f32 %v1155_v6, %v454_v37 }
 0x18c   :  { %v1157_v7 = vpop.eup %1156 }
 0x18d   :  { %v1159_v8 = vpop.eup %1158  ;;  %v513_v10 = vmul.f32 %v1157_v7, %v457_v43 }
 0x18e   :  { %v1161_v9 = vpop.eup %1160  ;;  %v512_v14 = vmul.f32 %v1159_v8, %v456_v31 }
 0x18f   :  { %v511_v12 = vmul.f32 %v1161_v9, %v455_v49 }
 0x190   :  { %v517_v16 = vpack.c.bf16 %v513_v10, %v512_v14 }
 0x191   :  { %v516_v15 = vpack.c.bf16 %v511_v12, %v510_v11 }
 0x193   :  { %1091 = vmatprep.mubr.bf16.mxu0 %v516_v15 }
 0x194   :  { %1092 = vmatmul.mubr.bf16.gmra.mxu0 %v517_v16 }
 0x243   :  { %v1089_v13 = vpop.f32.mrf.mxu0 }
 0x244   :  { %v1438_v20 = vadd.f32 %v1089_v13, %v990_v18 }
 0x245   :  { %v623_v17 = vpop.f32.mrf.mxu0 }
 0x246   :  { %v1440_v21 = vadd.f32 %v990_v18, %v623_v17  ;;  %v1001_v24 = vmul.f32 -1.442695, %v1438_v20 }
 0x247   :  { %v1090_v19 = vpop.f32.mrf.mxu0 }
 0x248   :  { %v1443_v25 = vadd.f32 %v1090_v19, %v990_v18  ;;  %v999_v29 = vmul.f32 -1.442695, %v1440_v21  ;;  %1162 = vpow2.f32 %v1001_v24 }
 0x249   :  { %v626_v23 = vpop.f32.mrf.mxu0 }
 0x24a   :  { %v1002_v33 = vmul.f32 -1.442695, %v1443_v25  ;;  %v1447_v35 = vadd.f32 %v990_v18, %v626_v23 }
 0x24c   :  { %v1000_v41 = vmul.f32 -1.442695, %v1447_v35 }
 0x254   :  { %v1093_v26 = vpop.f32.mrf.mxu0 }
 0x255   :  { %v648_v28 = vadd.f32 %v1093_v26, %v990_v18  ;;  %v1163_v43 = vpop.eup %1162 }
 0x256   :  { %v639_v30 = vpop.f32.mrf.mxu0  ;;  %v680_v48 = vadd.f32 1.0, %v1163_v43 }
 0x257   :  { %v1005_v31 = vmul.f32 -1.442695, %v648_v28  ;;  %v640_v32 = vadd.f32 %v990_v18, %v639_v30 }
 0x258   :  { %v1094_v34 = vpop.f32.mrf.mxu0 }
 0x259   :  { %1164 = vpow2.f32 %v1005_v31  ;;  %v1003_v36 = vmul.f32 -1.442695, %v640_v32  ;;  %v651_v37 = vadd.f32 %v1094_v34, %v990_v18 }
 0x25a   :  { %1166 = vpow2.f32 %v999_v29  ;;  %v642_v38 = vpop.f32.mrf.mxu0 }
 0x25b   :  { %1168 = vpow2.f32 %v1003_v36  ;;  %v1006_v39 = vmul.f32 -1.442695, %v651_v37  ;;  %v643_v40 = vadd.f32 %v990_v18, %v642_v38 }
 0x25c   :  { %1170 = vpow2.f32 %v1002_v33 }
 0x25d   :  { %1172 = vpow2.f32 %v1006_v39  ;;  %v1004_v42 = vmul.f32 -1.442695, %v643_v40 }
 0x25f   :  { %1174 = vpow2.f32 %v1004_v42 }
 0x260   :  { %1176 = vpow2.f32 %v1000_v41 }
 0x266   :  { %v1165_v44 = vpop.eup %1164 }
 0x267   :  { %v1167_v45 = vpop.eup %1166  ;;  %v684_v46 = vadd.f32 1.0, %v1165_v44 }
 0x268   :  { %v1169_v47 = vpop.eup %1168  ;;  %v678_v54 = vadd.f32 1.0, %v1167_v45 }
 0x269   :  { %v1171_v49 = vpop.eup %1170  ;;  %1178 = vrcp.f32 %v684_v46  ;;  %v682_v50 = vadd.f32 1.0, %v1169_v47 }
 0x26a   :  { %v1173_v51 = vpop.eup %1172  ;;  %v681_v55 = vadd.f32 1.0, %v1171_v49 }
 0x26b   :  { %1180 = vrcp.f32 %v682_v50  ;;  %v685_v52 = vadd.f32 1.0, %v1173_v51 }
 0x26c   :  { %v1175_v53 = vpop.eup %1174  ;;  %1182 = vrcp.f32 %v680_v48 }
 0x26d   :  { %1184 = vrcp.f32 %v685_v52  ;;  %v683_v56 = vadd.f32 1.0, %v1175_v53  ;;  %v1177_v57 = vpop.eup %1176 }
 0x26e   :  { %v679_v58 = vadd.f32 1.0, %v1177_v57 }
 0x26f   :  { %1186 = vrcp.f32 %v683_v56 }
 0x270   :  { %1188 = vrcp.f32 %v678_v54 }
 0x271   :  { %1190 = vrcp.f32 %v681_v55 }
 0x272   :  { %1192 = vrcp.f32 %v679_v58 }
 0x276   :  { %v1179_v59 = vpop.eup %1178 }
 0x277   :  { %v1450_v60 = vmul.f32 %v1179_v59, %v648_v28 }
 0x278   :  { %v1181_v61 = vpop.eup %1180 }
 0x279   :  { %v1183_v63 = vpop.eup %1182  ;;  %v1455_v0 = vmul.f32 %v1181_v61, %v640_v32  ;;  %v723_v1 = vmul.f32 %v1007_v62, %v1450_v60 }
 0x27a   :  { %v1185_v2 = vpop.eup %1184  ;;  %v1461_v6 = vmul.f32 %v1183_v63, %v1438_v20  ;;  %v1008_v20 = vld [vmem:[#allocation2] ss:$0 sm:$0xff] }
 0x27b   :  { %v1458_v3 = vmul.f32 %v1185_v2, %v651_v37  ;;  %737 = vadd.xlane.f32.xlu0 %v723_v1  ;;  %v721_v9 = vmul.f32 %v1007_v62, %v1455_v0 }
 0x27c   :  { %v1187_v4 = vpop.eup %1186  ;;  %v719_v14 = vmul.f32 %v1007_v62, %v1461_v6 }
 0x27d   :  { %v1189_v5 = vpop.eup %1188  ;;  %v1463_v7 = vmul.f32 %v1187_v4, %v643_v40  ;;  %v724_v8 = vmul.f32 %v1007_v62, %v1458_v3 }
 0x27e   :  { %v1191_v10 = vpop.eup %1190  ;;  %v1468_v11 = vmul.f32 %v1189_v5, %v1440_v21 }
 0x27f   :  { %739 = vadd.xlane.f32.xlu1 %v724_v8  ;;  %733 = vadd.xlane.f32.xlu0 %v721_v9  ;;  %v1471_v12 = vmul.f32 %v1191_v10, %v1443_v25  ;;  %v722_v15 = vmul.f32 %v1007_v62, %v1463_v7  ;;  %v1193_v16 = vpop.eup %1192 }
 0x280   :  { %v1476_v13 = vmul.f32 %v1193_v16, %v1447_v35  ;;  %v717_v18 = vmul.f32 %v1007_v62, %v1468_v11 }
 0x281   :  { %v720_v17 = vmul.f32 %v1007_v62, %v1471_v12 }
 0x282   :  { %v718_v19 = vmul.f32 %v1007_v62, %v1476_v13 }
 0x283   :  { %729 = vadd.xlane.f32.xlu1 %v719_v14  ;;  %735 = vadd.xlane.f32.xlu0 %v722_v15 }
 0x287   :  { %731 = vadd.xlane.f32.xlu0 %v720_v17  ;;  %725 = vadd.xlane.f32.xlu1 %v717_v18 }
 0x28b   :  { %727 = vadd.xlane.f32.xlu0 %v718_v19 }
 0x304   :  { %v738_v21 = vpop.xlane.xlu0 %737 }
 0x305   :  { %v754_v23 = vadd.f32 %v1008_v20, %v738_v21  ;;  %v853_v21 = vshrl.u32 %v128_v27, 7 }
 0x307   :  { %v1015_v24 = vmul.f32 -1.442695, %v754_v23 }
 0x308   :  { %v740_v25 = vpop.xlane.xlu1 %739  ;;  %v734_v26 = vpop.xlane.xlu0 %733 }
 0x309   :  { %1194 = vpow2.f32 %v1015_v24  ;;  %v755_v28 = vadd.f32 %v1008_v20, %v740_v25  ;;  %v752_v29 = vadd.f32 %v1008_v20, %v734_v26 }
 0x30b   :  { %v1016_v30 = vmul.f32 -1.442695, %v755_v28  ;;  %v1013_v31 = vmul.f32 -1.442695, %v752_v29  ;;  %v854_v28 = vadd.s32 8, %v853_v21 }
 0x30c   :  { %v730_v32 = vpop.xlane.xlu1 %729  ;;  %v736_v33 = vpop.xlane.xlu0 %735 }
 0x30d   :  { %1196 = vpow2.f32 %v1016_v30  ;;  %v750_v34 = vadd.f32 %v1008_v20, %v730_v32  ;;  %v753_v35 = vadd.f32 %v1008_v20, %v736_v33 }
 0x30e   :  { %1198 = vpow2.f32 %v1013_v31 }
 0x30f   :  { %v1011_v36 = vmul.f32 -1.442695, %v750_v34  ;;  %v1014_v37 = vmul.f32 -1.442695, %v753_v35 }
 0x310   :  { %v732_v38 = vpop.xlane.xlu0 %731  ;;  %v726_v39 = vpop.xlane.xlu1 %725 }
 0x311   :  { %1200 = vpow2.f32 %v1011_v36  ;;  %v751_v40 = vadd.f32 %v1008_v20, %v732_v38  ;;  %v748_v41 = vadd.f32 %v1008_v20, %v726_v39 }
 0x312   :  { %1202 = vpow2.f32 %v1014_v37 }
 0x313   :  { %v1012_v42 = vmul.f32 -1.442695, %v751_v40  ;;  %v1009_v43 = vmul.f32 -1.442695, %v748_v41 }
 0x314   :  { %v728_v44 = vpop.xlane.xlu0 %727 }
 0x315   :  { %1204 = vpow2.f32 %v1012_v42  ;;  %v749_v45 = vadd.f32 %v1008_v20, %v728_v44 }
 0x316   :  { %v1195_v46 = vpop.eup %1194  ;;  %1206 = vpow2.f32 %v1009_v43 }
 0x317   :  { %v786_v47 = vadd.f32 1.0, %v1195_v46  ;;  %v1010_v48 = vmul.f32 -1.442695, %v749_v45 }
 0x319   :  { %1208 = vrcp.f32 %v786_v47 }
 0x31a   :  { %v1197_v49 = vpop.eup %1196  ;;  %1210 = vpow2.f32 %v1010_v48 }
 0x31b   :  { %v1199_v50 = vpop.eup %1198  ;;  %v787_v51 = vadd.f32 1.0, %v1197_v49 }
 0x31c   :  { %v784_v52 = vadd.f32 1.0, %v1199_v50 }
 0x31d   :  { %1212 = vrcp.f32 %v787_v51 }
 0x31e   :  { %v1201_v53 = vpop.eup %1200  ;;  %1214 = vrcp.f32 %v784_v52 }
 0x31f   :  { %v1203_v54 = vpop.eup %1202  ;;  %v782_v55 = vadd.f32 1.0, %v1201_v53 }
 0x320   :  { %v785_v56 = vadd.f32 1.0, %v1203_v54 }
 0x321   :  { %1216 = vrcp.f32 %v782_v55 }
 0x322   :  { %v1205_v57 = vpop.eup %1204  ;;  %1218 = vrcp.f32 %v785_v56 }
 0x323   :  { %v1207_v58 = vpop.eup %1206  ;;  %v783_v59 = vadd.f32 1.0, %v1205_v57 }
 0x324   :  { %v780_v61 = vadd.f32 1.0, %v1207_v58 }
 0x325   :  { %1220 = vrcp.f32 %v783_v59 }
 0x326   :  { %v1209_v62 = vpop.eup %1208  ;;  %1222 = vrcp.f32 %v780_v61 }
 0x327   :  { %v1211_v63 = vpop.eup %1210  ;;  %836 = vperm.xlu1 %1115, %v1209_v62  }
 0x328   :  { %v781_v1 = vadd.f32 1.0, %v1211_v63 }
 0x32a   :  { %v1213_v2 = vpop.eup %1212  ;;  %1224 = vrcp.f32 %v781_v1 }
 0x32b   :  { %v1215_v4 = vpop.eup %1214  ;;  %841 = vperm.xlu0 %1114, %v1213_v2  }
 0x32c   :  { %826 = vperm.xlu1 %1115, %v1215_v4  }
 0x32e   :  { %v1217_v5 = vpop.eup %1216 }
 0x32f   :  { %v1219_v8 = vpop.eup %1218  ;;  %816 = vperm.xlu0 %1114, %v1217_v5  }
 0x330   :  { %831 = vperm.xlu1 %1115, %v1219_v8  }
 0x332   :  { %v1221_v9 = vpop.eup %1220 }
 0x333   :  { %v1223_v10 = vpop.eup %1222 }
 0x334   :  { %821 = vperm.xlu1 %1115, %v1221_v9   ;;  %806 = vperm.xlu0 %1114, %v1223_v10  }
 0x337   :  { %v1225_v14 = vpop.eup %1224 }
 0x338   :  { %811 = vperm.xlu1 %1115, %v1225_v14  }
 0x3a2   :  { %v837_v15 = vpop.permute.xlu1 %836 }
 0x3a3   :  { %v850_v17 = vmul.f32 %v837_v15, %v1450_v60  ;;  %v1017_v60 = vld [vmem:[%s1504_s2] ss:$0 sm:$0xff]  ;;  %s1251_s2 = smov [#allocation3]  }
 0x3a4   :  { %vm860_vm12 = vcmp.eq.s32.totalorder %v853_v21, %v1017_v60  ;;  %vm861_vm13 = vcmp.eq.s32.totalorder %v854_v28, %v1017_v60  ;;  %s927_s17 = sshll.u32 %s1251_s2, 4  ;;  %s928_s17 = int_to_ptr.vmem [resolvable:$true] %s927_s17 }
 0x3a5   :  { %v1018_v34 = vsel %vm860_vm12, 1.0, %v1249_v22  ;;  %v1019_v35 = vsel %vm861_vm13, 1.0, %v1249_v22  ;;  %s1226_s18 = scalar_lea.vmem %s928_s17, 256  ;;  %p1231_p1 = scmp.lt.s32.totalorder %s928_s17, %s928_s17 }
 0x3a6   :  { %v842_v16 = vpop.permute.xlu0 %841  ;;  %p1227_p0 = scmp.ne.s32.totalorder %s928_s17, %s1226_s18  ;;  %p1232_p2 = scmp.lt.s32.totalorder %s1226_s18, %s1226_s18 }
 0x3a7   :  { %v851_v18 = vmul.f32 %v842_v16, %v1458_v3  ;;  %v827_v19 = vpop.permute.xlu1 %826 }
 0x3a8   :  { %v848_v25 = vmul.f32 %v827_v19, %v1455_v0  ;;  %p1233_p3 = por %p1232_p2, %p1231_p1 }
 0x3a9   :  { %v872_v20 = vpack.c.bf16 %v851_v18, %v850_v17 }
 0x3aa   :  { %v817_v23 = vpop.permute.xlu0 %816  ;;  %p1234_p4 = pnand %p1233_p3, %p1227_p0 }
 0x3ab   :  { %v832_v24 = vpop.permute.xlu1 %831  ;;  %1096 = vmatpush3.bf16.msra.mxu1 %v872_v20  ;;  %v846_v30 = vmul.f32 %v817_v23, %v1461_v6 }
 0x3ac   :  { %v849_v26 = vmul.f32 %v832_v24, %v1463_v7  ;;  %1097 = vmatprep.subr.bf16.mxu1 %v1249_v22 }
 0x3ae   :  { %v871_v29 = vpack.c.bf16 %v849_v26, %v848_v25 }
 0x3af   :  { %v822_v3 = vpop.permute.xlu1 %821  ;;  %v807_v31 = vpop.permute.xlu0 %806 }
 0x3b0   :  { %v847_v27 = vmul.f32 %v822_v3, %v1471_v12  ;;  %1098 = vmatpush3.bf16.msra.mxu1 %v871_v29  ;;  %v844_v32 = vmul.f32 %v807_v31, %v1468_v11  ;;  %v866_v12 = vpack.c.bf16 %v1019_v35, %v1018_v34 }
 0x3b1   :  { %1099 = vmatprep.subr.bf16.mxu1 %v1249_v22 }
 0x3b2   :  { %v870_v0 = vpack.c.bf16 %v847_v27, %v846_v30 }
 0x3b3   :  { %v812_v7 = vpop.permute.xlu1 %811 }
 0x3b4   :  { %v845_v33 = vmul.f32 %v812_v7, %v1476_v13  ;;  %1100 = vmatpush3.bf16.msra.mxu1 %v870_v0 }
 0x3b5   :  { %1101 = vmatprep.subr.bf16.mxu1 %v1249_v22 }
 0x3b6   :  { %v869_v6 = vpack.c.bf16 %v845_v33, %v844_v32 }
 0x3b8   :  { %1102 = vmatpush3.bf16.msra.mxu1 %v869_v6 }
 0x3bb   :  { %1104 = vmatmul.mubr.msk.bf16.vlgmr.msra.gmra.mxu1 %vm873_vm14, %v866_v12 }
 0x47b   :  { %v911_v36 = vpop.f32.mrf.mxu1 }
 0x47c   :  { %920 = vst [vmem:[#allocation3] sm:$0xff] %v911_v36 }
 0x47d   :  { %v1105_v37 = vpop.f32.mrf.mxu1 }
 0x47f   :  { %v914_v11 = vpop.f32.mrf.mxu1 }
 0x480   :  { %921 = vst [vmem:[#allocation3 + $0x8] sm:$0xff] %v914_v11 }
 0x481   :  { %v1106_v13 = vpop.f32.mrf.mxu1 }
 0x482   :  { %1237 = shalt.err (!%p1234_p4)
}
 0x483   :  { %s1252_s5 = smov 128   ;;  %s1253_s19 = smov 8  }
 0x484   :  { %933 = dma.vmem_to_hbm [thread:$0]  %s928_s17, 256, %s1513_s11, [#allocation4], %s1252_s5, %s1252_s5, %s1253_s19  }
 0x485   :  { %1246 = dma.done.wait [#allocation4], 256  }
 0x486   :  { %1247 = vsyncadd [#allocation4], 4294967040 }
 0x487   :  { %937 = vsyncpa [#allocation4], 1 }

// kernel: tpu_custom_call.1
= control target key start
LH: loop header
LB: loop body
LE: loop exit
PB: predicated region body
PF: predicated region fallthrough
CT: control target
= control target key end

     0   :  { %s1502_s0 = inlined_call_operand.vmem [shape: s32[64,1], index: 0, kind: input, shape index: {}]   ;;  %s1503_s1 = inlined_call_operand.vmem [shape: s32[64,1], index: 1, kind: input, shape index: {}]   ;;  %s1504_s2 = inlined_call_operand.vmem [shape: s32[1,64], index: 2, kind: input, shape index: {}]   ;;  %s1505_s3 = inlined_call_operand.vmem [shape: bf16[64,8], index: 3, kind: input, shape index: {}]   ;;  %s1506_s4 = inlined_call_operand.vmem [shape: bf16[32,128], index: 4, kind: input, shape index: {}]   ;;  %s1507_s5 = inlined_call_operand.vmem [shape: bf16[8,128], index: 5, kind: input, shape index: {}]   ;;  %s1508_s6 = inlined_call_operand.vmem [shape: f32[1,128], index: 6, kind: input, shape index: {}]   ;;  %s1509_s7 = inlined_call_operand.vmem [shape: bf16[128,128], index: 7, kind: input, shape index: {}]   ;;  %s1510_s8 = inlined_call_operand.vmem [shape: f32[1,128], index: 8, kind: input, shape index: {}]   ;;  %s1511_s9 = inlined_call_operand.vmem [shape: f32[1,128], index: 9, kind: input, shape index: {}]   ;;  %s1512_s10 = inlined_call_operand.<no memory space> [shape: f32[1,1], index: 10, kind: input, shape index: {}]   ;;  %s1513_s11 = inlined_call_operand.hbm [shape: f32[16,128], index: 11, kind: output, shape index: {}]  }
   0x1   :  { %v16_v0 = vstv %s1512_s10 }
   0x2   :  { %17 = vst [vmem:[#allocation2] sm:$0x1] %v16_v0 }
   0x3   :  { %v170_v1 = vld [vmem:[%s1503_s1] sm:$0xff]  ;;  %v1248_v3 = vmov 0   ;;  %v171_v4 = vld [vmem:[%s1503_s1 + $0x8] sm:$0xff]  ;;  %vm284_vm0 = vcmask 1043456   ;;  %v133_v6 = vld [vmem:[%s1502_s0 + $0x18] sm:$0xff]  ;;  %vm271_vm1 = vcmask 64512  }
   0x4   :  { %v130_v2 = vld [vmem:[%s1502_s0] sm:$0xff]  ;;  %1115 = vset.pattern.permute.xlu1 %v1248_v3  ;;  %1114 = vset.pattern.permute.xlu0 %v1248_v3  ;;  %v131_v5 = vld [vmem:[%s1502_s0 + $0x8] sm:$0xff]  ;;  %v132_v7 = vld [vmem:[%s1502_s0 + $0x10] sm:$0xff] }
   0x5   :  { %179 = vperm.xlu1 %1115, %v170_v1   ;;  %139 = vperm.xlu0 %1114, %v130_v2   ;;  %v250_v8 = vld [vmem:[%s1507_s5] sm:$0xf]  ;;  %v1117_v11 = vld [vmem:[%s1505_s3 + $0x8] sm:$0xff]   ;;  %v1118_v12 = vld [vmem:[%s1505_s3 + $0x10] sm:$0xff]  }
   0x6   :  { %v286_v9 = vsel %vm284_vm0, %v250_v8, 0  ;;  %v1116_v10 = vld [vmem:[%s1505_s3] sm:$0xff]   ;;  %1107 = vmatprep.subr.msk.bf16.mxu1 %vm284_vm0, %v250_v8  ;;  %v173_v13 = vld [vmem:[%s1503_s1 + $0x18] sm:$0xff]  ;;  %v172_v14 = vld [vmem:[%s1503_s1 + $0x10] sm:$0xff] }
   0x7   :  { %1050 = vmatpush3.bf16.msra.mxu1 %v286_v9  ;;  %1051 = vmatprep.mubr.msk.bf16.mxu1 %vm271_vm1, %v1116_v10  ;;  %v1120_v15 = vld [vmem:[%s1506_s4 + $0x8] sm:$0xff]   ;;  %v1121_v16 = vld [vmem:[%s1506_s4] sm:$0xff]   ;;  %v1119_v19 = vld [vmem:[%s1505_s3 + $0x18] sm:$0xff]  }
   0x8   :  { %1059 = vmatprep.subr.bf16.mxu1 %v1120_v15  ;;  %v135_v17 = vld [vmem:[%s1502_s0 + $0x28] sm:$0xff]  ;;  %v134_v18 = vld [vmem:[%s1502_s0 + $0x20] sm:$0xff] }
   0x9   :  { %182 = vperm.xlu1 %1115, %v171_v4   ;;  %142 = vperm.xlu0 %1114, %v131_v5  }
   0xa   :  { %1052 = vmatmul.mubr.msk.bf16.vlgmr.msra.gmra.mxu1 %vm271_vm1, %v1117_v11 }
   0xb   :  { %1055 = vmatprep.mubr.msk.bf16.mxu1 %vm271_vm1, %v1118_v12  ;;  %1060 = vmatpush3.bf16.msra.mxu1 %v1120_v15 }
   0xc   :  { %1061 = vmatprep.subr.bf16.mxu1 %v1121_v16 }
   0xd   :  { %148 = vperm.xlu1 %1115, %v133_v6   ;;  %145 = vperm.xlu0 %1114, %v132_v7  }
   0xf   :  { %1062 = vmatpush3.bf16.msra.mxu1 %v1121_v16 }
  0x11   :  { %188 = vperm.xlu1 %1115, %v173_v13   ;;  %185 = vperm.xlu0 %1114, %v172_v14  }
  0x12   :  { %18 = vsyncpa [#allocation4], 0  ;;  %v175_v20 = vld [vmem:[%s1503_s1 + $0x28] sm:$0xff]  ;;  %v174_v21 = vld [vmem:[%s1503_s1 + $0x20] sm:$0xff]  ;;  %1056 = vmatmul.mubr.msk.bf16.gmra.mxu1 %vm271_vm1, %v1119_v19  ;;  %v1249_v22 = vmov 0.0   ;;  %v128_v27 = vlaneseq  ;;  %vm365_vm8 = vcmask 261120  }
  0x13   :  { %1095 = vmatprep.subr.bf16.mxu1 %v1249_v22  ;;  %v137_v23 = vld [vmem:[%s1502_s0 + $0x38] sm:$0xff]  ;;  %v136_v24 = vld [vmem:[%s1502_s0 + $0x30] sm:$0xff]  ;;  %v1124_v59 = vld [vmem:[%s1509_s7 + $0x28] sm:$0xff]  }
  0x14   :  { %v177_v25 = vld [vmem:[%s1503_s1 + $0x38] sm:$0xff]  ;;  %v176_v26 = vld [vmem:[%s1503_s1 + $0x30] sm:$0xff]  ;;  %v129_v28 = vand.u32 127, %v128_v27  ;;  %v1125_v60 = vld [vmem:[%s1509_s7 + $0x20] sm:$0xff]  }
  0x15   :  { %154 = vperm.xlu1 %1115, %v135_v17   ;;  %151 = vperm.xlu0 %1114, %v134_v18   ;;  %v1122_v57 = vld [vmem:[%s1509_s7 + $0x38] sm:$0xff]   ;;  %v1123_v58 = vld [vmem:[%s1509_s7 + $0x30] sm:$0xff]   ;;  %v1128_v63 = vld [vmem:[%s1509_s7 + $0x8] sm:$0xff]  }
  0x16   :  { %1071 = vmatprep.subr.bf16.mxu0 %v1122_v57  ;;  %v1126_v61 = vld [vmem:[%s1509_s7 + $0x18] sm:$0xff]   ;;  %v1127_v62 = vld [vmem:[%s1509_s7 + $0x10] sm:$0xff]   ;;  %v1129_v0 = vld [vmem:[%s1509_s7] sm:$0xff]  }
  0x17   :  { %1072 = vmatpush3.bf16.msra.mxu0 %v1122_v57  ;;  %v981_v10 = vld [vmem:[%s1508_s6] ss:$0 sm:$0xff] }
  0x18   :  { %1073 = vmatprep.subr.bf16.mxu0 %v1123_v58 }
  0x19   :  { %194 = vperm.xlu1 %1115, %v175_v20   ;;  %191 = vperm.xlu0 %1114, %v174_v21  }
  0x1b   :  { %1074 = vmatpush3.bf16.msra.mxu0 %v1123_v58 }
  0x1c   :  { %1075 = vmatprep.subr.bf16.mxu0 %v1124_v59 }
  0x1d   :  { %160 = vperm.xlu1 %1115, %v137_v23   ;;  %157 = vperm.xlu0 %1114, %v136_v24  }
  0x1f   :  { %1076 = vmatpush3.bf16.msra.mxu0 %v1124_v59 }
  0x20   :  { %1077 = vmatprep.subr.bf16.mxu0 %v1125_v60 }
  0x21   :  { %200 = vperm.xlu1 %1115, %v177_v25   ;;  %197 = vperm.xlu0 %1114, %v176_v26  }
  0x23   :  { %1078 = vmatpush3.bf16.msra.mxu0 %v1125_v60 }
  0x24   :  { %1079 = vmatprep.subr.bf16.mxu0 %v1126_v61 }
  0x27   :  { %1080 = vmatpush3.bf16.msra.mxu0 %v1126_v61 }
  0x28   :  { %1081 = vmatprep.subr.bf16.mxu0 %v1127_v62 }
  0x2b   :  { %1082 = vmatpush3.bf16.msra.mxu0 %v1127_v62 }
  0x2c   :  { %1083 = vmatprep.subr.bf16.mxu0 %v1128_v63 }
  0x2f   :  { %1084 = vmatpush3.bf16.msra.mxu0 %v1128_v63 }
  0x30   :  { %1085 = vmatprep.subr.bf16.mxu0 %v1129_v0 }
  0x33   :  { %1086 = vmatpush3.bf16.msra.mxu0 %v1129_v0 }
  0x80   :  { %v180_v29 = vpop.permute.xlu1 %179  ;;  %v140_v30 = vpop.permute.xlu0 %139 }
  0x81   :  { %vm202_vm2 = vcmp.eq.s32.totalorder %v129_v28, %v180_v29  ;;  %vm162_vm3 = vcmp.eq.s32.totalorder %v129_v28, %v140_v30 }
  0x82   :  { %vm210_vm4 = vmor %vm162_vm3, %vm202_vm2 }
  0x83   :  { %v959_v33 = vsel %vm210_vm4, 1.0, %v1249_v22 }
  0x84   :  { %v183_v31 = vpop.permute.xlu1 %182  ;;  %v143_v32 = vpop.permute.xlu0 %142 }
  0x85   :  { %vm203_vm5 = vcmp.eq.s32.totalorder %v129_v28, %v183_v31  ;;  %vm163_vm6 = vcmp.eq.s32.totalorder %v129_v28, %v143_v32 }
  0x86   :  { %vm211_vm7 = vmor %vm163_vm6, %vm203_vm5 }
  0x87   :  { %v960_v34 = vsel %vm211_vm7, 1.0, %v1249_v22 }
  0x88   :  { %v234_v35 = vpack.c.bf16 %v960_v34, %v959_v33  ;;  %v149_v36 = vpop.permute.xlu1 %148  ;;  %v146_v37 = vpop.permute.xlu0 %145 }
  0x89   :  { %vm165_vm9 = vcmp.eq.s32.totalorder %v129_v28, %v149_v36  ;;  %vm164_vm12 = vcmp.eq.s32.totalorder %v129_v28, %v146_v37 }
  0x8a   :  { %1063 = vmatprep.mubr.msk.bf16.mxu1 %vm365_vm8, %v234_v35 }
  0x8c   :  { %v189_v38 = vpop.permute.xlu1 %188  ;;  %v186_v39 = vpop.permute.xlu0 %185 }
  0x8d   :  { %vm205_vm10 = vcmp.eq.s32.totalorder %v129_v28, %v189_v38  ;;  %vm204_vm11 = vcmp.eq.s32.totalorder %v129_v28, %v186_v39 }
  0x8e   :  { %vm213_vm13 = vmor %vm165_vm9, %vm205_vm10 }
  0x8f   :  { %v962_v40 = vsel %vm213_vm13, 1.0, %v1249_v22  ;;  %vm212_vm14 = vmor %vm164_vm12, %vm204_vm11 }
  0x90   :  { %v961_v41 = vsel %vm212_vm14, 1.0, %v1249_v22  ;;  %v155_v42 = vpop.permute.xlu1 %154  ;;  %v152_v43 = vpop.permute.xlu0 %151  ;;  %vm873_vm14 = vcmask 523264  }
  0x91   :  { %v235_v44 = vpack.c.bf16 %v962_v40, %v961_v41  ;;  %vm167_vm15 = vcmp.eq.s32.totalorder %v129_v28, %v155_v42  ;;  %vm166_vm2 = vcmp.eq.s32.totalorder %v129_v28, %v152_v43 }
  0x93   :  { %1064 = vmatmul.mubr.msk.bf16.vlgmr.msra.gmra.mxu1 %vm365_vm8, %v235_v44 }
  0x94   :  { %v195_v45 = vpop.permute.xlu1 %194  ;;  %v192_v46 = vpop.permute.xlu0 %191 }
  0x95   :  { %vm207_vm0 = vcmp.eq.s32.totalorder %v129_v28, %v195_v45  ;;  %vm206_vm1 = vcmp.eq.s32.totalorder %v129_v28, %v192_v46 }
  0x96   :  { %vm215_vm3 = vmor %vm167_vm15, %vm207_vm0 }
  0x97   :  { %v964_v47 = vsel %vm215_vm3, 1.0, %v1249_v22  ;;  %vm214_vm4 = vmor %vm166_vm2, %vm206_vm1 }
  0x98   :  { %v963_v48 = vsel %vm214_vm4, 1.0, %v1249_v22  ;;  %v161_v49 = vpop.permute.xlu1 %160  ;;  %v158_v50 = vpop.permute.xlu0 %157 }
  0x99   :  { %v236_v51 = vpack.c.bf16 %v964_v47, %v963_v48  ;;  %vm169_vm5 = vcmp.eq.s32.totalorder %v129_v28, %v161_v49  ;;  %vm168_vm9 = vcmp.eq.s32.totalorder %v129_v28, %v158_v50 }
  0x9b   :  { %1067 = vmatprep.mubr.msk.bf16.mxu1 %vm365_vm8, %v236_v51 }
  0x9c   :  { %v201_v52 = vpop.permute.xlu1 %200  ;;  %v198_v53 = vpop.permute.xlu0 %197 }
  0x9d   :  { %vm209_vm6 = vcmp.eq.s32.totalorder %v129_v28, %v201_v52  ;;  %vm208_vm7 = vcmp.eq.s32.totalorder %v129_v28, %v198_v53 }
  0x9e   :  { %vm217_vm10 = vmor %vm169_vm5, %vm209_vm6 }
  0x9f   :  { %v966_v54 = vsel %vm217_vm10, 1.0, %v1249_v22  ;;  %vm216_vm11 = vmor %vm168_vm9, %vm208_vm7 }
  0xa0   :  { %v965_v55 = vsel %vm216_vm11, 1.0, %v1249_v22 }
  0xa1   :  { %v237_v56 = vpack.c.bf16 %v966_v54, %v965_v55 }
  0xa3   :  { %1068 = vmatmul.mubr.msk.bf16.gmra.mxu1 %vm365_vm8, %v237_v56  ;;  %vm1250_vm8 = vmmov 0  }
  0xa4   :  { %1103 = vmatprep.mubr.msk.bf16.mxu1 %vm1250_vm8, %v1249_v22 }
  0xca   :  { %v1053_v1 = vpop.f32.mrf.mxu1 }
  0xcc   :  { %v322_v2 = vpop.f32.mrf.mxu1 }
  0xce   :  { %v1054_v3 = vpop.f32.mrf.mxu1 }
  0xd0   :  { %v325_v4 = vpop.f32.mrf.mxu1 }
  0xd2   :  { %v1057_v5 = vpop.f32.mrf.mxu1 }
  0xd4   :  { %v338_v6 = vpop.f32.mrf.mxu1 }
  0xd6   :  { %v1058_v7 = vpop.f32.mrf.mxu1 }
  0xd8   :  { %v341_v8 = vpop.f32.mrf.mxu1 }
 0x153   :  { %v1065_v9 = vpop.f32.mrf.mxu1 }
 0x154   :  { %v421_v11 = vadd.f32 %v1065_v9, %v1053_v1 }
 0x155   :  { %v412_v12 = vpop.f32.mrf.mxu1 }
 0x156   :  { %v1431_v13 = vadd.f32 %v981_v10, %v421_v11  ;;  %v413_v14 = vadd.f32 %v412_v12, %v322_v2 }
 0x157   :  { %v1066_v15 = vpop.f32.mrf.mxu1 }
 0x158   :  { %v984_v16 = vmul.f32 -1.442695, %v1431_v13  ;;  %v450_v17 = vadd.f32 %v981_v10, %v413_v14  ;;  %v424_v18 = vadd.f32 %v1066_v15, %v1054_v3 }
 0x159   :  { %v415_v19 = vpop.f32.mrf.mxu1 }
 0x15a   :  { %1130 = vpow2.f32 %v984_v16  ;;  %v982_v20 = vmul.f32 -1.442695, %v450_v17  ;;  %v453_v21 = vadd.f32 %v981_v10, %v424_v18  ;;  %v416_v23 = vadd.f32 %v415_v19, %v325_v4  ;;  %v990_v18 = vld [vmem:[%s1510_s8] ss:$0 sm:$0xff] }
 0x15c   :  { %1132 = vpow2.f32 %v982_v20  ;;  %v985_v24 = vmul.f32 -1.442695, %v453_v21  ;;  %v451_v25 = vadd.f32 %v981_v10, %v416_v23 }
 0x15e   :  { %1134 = vpow2.f32 %v985_v24  ;;  %v983_v26 = vmul.f32 -1.442695, %v451_v25 }
 0x160   :  { %1136 = vpow2.f32 %v983_v26 }
 0x163   :  { %v1069_v28 = vpop.f32.mrf.mxu1 }
 0x164   :  { %v437_v29 = vadd.f32 %v1069_v28, %v1057_v5 }
 0x165   :  { %v428_v30 = vpop.f32.mrf.mxu1 }
 0x166   :  { %v456_v31 = vadd.f32 %v981_v10, %v437_v29  ;;  %v429_v32 = vadd.f32 %v428_v30, %v338_v6 }
 0x167   :  { %v1131_v33 = vpop.eup %1130  ;;  %v1070_v34 = vpop.f32.mrf.mxu1 }
 0x168   :  { %v484_v35 = vadd.f32 1.0, %v1131_v33  ;;  %v988_v36 = vmul.f32 -1.442695, %v456_v31  ;;  %v454_v37 = vadd.f32 %v981_v10, %v429_v32  ;;  %v440_v38 = vadd.f32 %v1070_v34, %v1058_v7 }
 0x169   :  { %v1133_v39 = vpop.eup %1132  ;;  %v431_v40 = vpop.f32.mrf.mxu1 }
 0x16a   :  { %1138 = vrcp.f32 %v484_v35  ;;  %v482_v41 = vadd.f32 1.0, %v1133_v39  ;;  %v986_v42 = vmul.f32 -1.442695, %v454_v37  ;;  %v457_v43 = vadd.f32 %v981_v10, %v440_v38 }
 0x16b   :  { %v1135_v44 = vpop.eup %1134  ;;  %1140 = vpow2.f32 %v988_v36  ;;  %v432_v45 = vadd.f32 %v431_v40, %v341_v8 }
 0x16c   :  { %1142 = vrcp.f32 %v482_v41  ;;  %v485_v46 = vadd.f32 1.0, %v1135_v44  ;;  %v989_v47 = vmul.f32 -1.442695, %v457_v43 }
 0x16d   :  { %v1137_v48 = vpop.eup %1136  ;;  %1144 = vpow2.f32 %v986_v42  ;;  %v455_v49 = vadd.f32 %v981_v10, %v432_v45 }
 0x16e   :  { %1146 = vrcp.f32 %v485_v46  ;;  %v483_v50 = vadd.f32 1.0, %v1137_v48 }
 0x16f   :  { %1148 = vpow2.f32 %v989_v47  ;;  %v987_v51 = vmul.f32 -1.442695, %v455_v49 }
 0x170   :  { %1150 = vrcp.f32 %v483_v50 }
 0x171   :  { %1152 = vpow2.f32 %v987_v51 }
 0x177   :  { %v1139_v52 = vpop.eup %1138 }
 0x178   :  { %v1141_v53 = vpop.eup %1140  ;;  %v508_v2 = vmul.f32 %v1139_v52, %v1431_v13 }
 0x179   :  { %v1143_v54 = vpop.eup %1142  ;;  %v488_v59 = vadd.f32 1.0, %v1141_v53 }
 0x17a   :  { %v1145_v55 = vpop.eup %1144  ;;  %v506_v0 = vmul.f32 %v1143_v54, %v450_v17 }
 0x17b   :  { %v1147_v56 = vpop.eup %1146  ;;  %v486_v57 = vadd.f32 1.0, %v1145_v55 }
 0x17c   :  { %v1149_v58 = vpop.eup %1148  ;;  %v509_v61 = vmul.f32 %v1147_v56, %v453_v21 }
 0x17d   :  { %v1151_v60 = vpop.eup %1150  ;;  %v489_v62 = vadd.f32 1.0, %v1149_v58  ;;  %1154 = vrcp.f32 %v486_v57 }
 0x17e   :  { %v1153_v63 = vpop.eup %1152  ;;  %v507_v1 = vmul.f32 %v1151_v60, %v451_v25  ;;  %v515_v5 = vpack.c.bf16 %v509_v61, %v508_v2 }
 0x17f   :  { %1156 = vrcp.f32 %v489_v62  ;;  %v487_v3 = vadd.f32 1.0, %v1153_v63  ;;  %v1007_v62 = vld [vmem:[%s1511_s9] ss:$0 sm:$0xff] }
 0x180   :  { %1158 = vrcp.f32 %v488_v59  ;;  %v514_v4 = vpack.c.bf16 %v507_v1, %v506_v0 }
 0x181   :  { %1160 = vrcp.f32 %v487_v3 }
 0x182   :  { %1087 = vmatprep.mubr.bf16.mxu0 %v514_v4 }
 0x183   :  { %1088 = vmatmul.mubr.bf16.vlgmr.msra.gmra.mxu0 %v515_v5 }
 0x18a   :  { %v1155_v6 = vpop.eup %1154 }
 0x18b   :  { %v510_v11 = vmul.f32 %v1155_v6, %v454_v37 }
 0x18c   :  { %v1157_v7 = vpop.eup %1156 }
 0x18d   :  { %v1159_v8 = vpop.eup %1158  ;;  %v513_v10 = vmul.f32 %v1157_v7, %v457_v43 }
 0x18e   :  { %v1161_v9 = vpop.eup %1160  ;;  %v512_v14 = vmul.f32 %v1159_v8, %v456_v31 }
 0x18f   :  { %v511_v12 = vmul.f32 %v1161_v9, %v455_v49 }
 0x190   :  { %v517_v16 = vpack.c.bf16 %v513_v10, %v512_v14 }
 0x191   :  { %v516_v15 = vpack.c.bf16 %v511_v12, %v510_v11 }
 0x193   :  { %1091 = vmatprep.mubr.bf16.mxu0 %v516_v15 }
 0x194   :  { %1092 = vmatmul.mubr.bf16.gmra.mxu0 %v517_v16 }
 0x243   :  { %v1089_v13 = vpop.f32.mrf.mxu0 }
 0x244   :  { %v1438_v20 = vadd.f32 %v1089_v13, %v990_v18 }
 0x245   :  { %v623_v17 = vpop.f32.mrf.mxu0 }
 0x246   :  { %v1440_v21 = vadd.f32 %v990_v18, %v623_v17  ;;  %v1001_v24 = vmul.f32 -1.442695, %v1438_v20 }
 0x247   :  { %v1090_v19 = vpop.f32.mrf.mxu0 }
 0x248   :  { %v1443_v25 = vadd.f32 %v1090_v19, %v990_v18  ;;  %v999_v29 = vmul.f32 -1.442695, %v1440_v21  ;;  %1162 = vpow2.f32 %v1001_v24 }
 0x249   :  { %v626_v23 = vpop.f32.mrf.mxu0 }
 0x24a   :  { %v1002_v33 = vmul.f32 -1.442695, %v1443_v25  ;;  %v1447_v35 = vadd.f32 %v990_v18, %v626_v23 }
 0x24c   :  { %v1000_v41 = vmul.f32 -1.442695, %v1447_v35 }
 0x254   :  { %v1093_v26 = vpop.f32.mrf.mxu0 }
 0x255   :  { %v648_v28 = vadd.f32 %v1093_v26, %v990_v18  ;;  %v1163_v43 = vpop.eup %1162 }
 0x256   :  { %v639_v30 = vpop.f32.mrf.mxu0  ;;  %v680_v48 = vadd.f32 1.0, %v1163_v43 }
 0x257   :  { %v1005_v31 = vmul.f32 -1.442695, %v648_v28  ;;  %v640_v32 = vadd.f32 %v990_v18, %v639_v30 }
 0x258   :  { %v1094_v34 = vpop.f32.mrf.mxu0 }
 0x259   :  { %1164 = vpow2.f32 %v1005_v31  ;;  %v1003_v36 = vmul.f32 -1.442695, %v640_v32  ;;  %v651_v37 = vadd.f32 %v1094_v34, %v990_v18 }
 0x25a   :  { %1166 = vpow2.f32 %v999_v29  ;;  %v642_v38 = vpop.f32.mrf.mxu0 }
 0x25b   :  { %1168 = vpow2.f32 %v1003_v36  ;;  %v1006_v39 = vmul.f32 -1.442695, %v651_v37  ;;  %v643_v40 = vadd.f32 %v990_v18, %v642_v38 }
 0x25c   :  { %1170 = vpow2.f32 %v1002_v33 }
 0x25d   :  { %1172 = vpow2.f32 %v1006_v39  ;;  %v1004_v42 = vmul.f32 -1.442695, %v643_v40 }
 0x25f   :  { %1174 = vpow2.f32 %v1004_v42 }
 0x260   :  { %1176 = vpow2.f32 %v1000_v41 }
 0x266   :  { %v1165_v44 = vpop.eup %1164 }
 0x267   :  { %v1167_v45 = vpop.eup %1166  ;;  %v684_v46 = vadd.f32 1.0, %v1165_v44 }
 0x268   :  { %v1169_v47 = vpop.eup %1168  ;;  %v678_v54 = vadd.f32 1.0, %v1167_v45 }
 0x269   :  { %v1171_v49 = vpop.eup %1170  ;;  %1178 = vrcp.f32 %v684_v46  ;;  %v682_v50 = vadd.f32 1.0, %v1169_v47 }
 0x26a   :  { %v1173_v51 = vpop.eup %1172  ;;  %v681_v55 = vadd.f32 1.0, %v1171_v49 }
 0x26b   :  { %1180 = vrcp.f32 %v682_v50  ;;  %v685_v52 = vadd.f32 1.0, %v1173_v51 }
 0x26c   :  { %v1175_v53 = vpop.eup %1174  ;;  %1182 = vrcp.f32 %v680_v48 }
 0x26d   :  { %1184 = vrcp.f32 %v685_v52  ;;  %v683_v56 = vadd.f32 1.0, %v1175_v53  ;;  %v1177_v57 = vpop.eup %1176 }
 0x26e   :  { %v679_v58 = vadd.f32 1.0, %v1177_v57 }
 0x26f   :  { %1186 = vrcp.f32 %v683_v56 }
 0x270   :  { %1188 = vrcp.f32 %v678_v54 }
 0x271   :  { %1190 = vrcp.f32 %v681_v55 }
 0x272   :  { %1192 = vrcp.f32 %v679_v58 }
 0x276   :  { %v1179_v59 = vpop.eup %1178 }
 0x277   :  { %v1450_v60 = vmul.f32 %v1179_v59, %v648_v28 }
 0x278   :  { %v1181_v61 = vpop.eup %1180 }
 0x279   :  { %v1183_v63 = vpop.eup %1182  ;;  %v1455_v0 = vmul.f32 %v1181_v61, %v640_v32  ;;  %v723_v1 = vmul.f32 %v1007_v62, %v1450_v60 }
 0x27a   :  { %v1185_v2 = vpop.eup %1184  ;;  %v1461_v6 = vmul.f32 %v1183_v63, %v1438_v20  ;;  %v1008_v20 = vld [vmem:[#allocation2] ss:$0 sm:$0xff] }
 0x27b   :  { %v1458_v3 = vmul.f32 %v1185_v2, %v651_v37  ;;  %737 = vadd.xlane.f32.xlu0 %v723_v1  ;;  %v721_v9 = vmul.f32 %v1007_v62, %v1455_v0 }
 0x27c   :  { %v1187_v4 = vpop.eup %1186  ;;  %v719_v14 = vmul.f32 %v1007_v62, %v1461_v6 }
 0x27d   :  { %v1189_v5 = vpop.eup %1188  ;;  %v1463_v7 = vmul.f32 %v1187_v4, %v643_v40  ;;  %v724_v8 = vmul.f32 %v1007_v62, %v1458_v3 }
 0x27e   :  { %v1191_v10 = vpop.eup %1190  ;;  %v1468_v11 = vmul.f32 %v1189_v5, %v1440_v21 }
 0x27f   :  { %739 = vadd.xlane.f32.xlu1 %v724_v8  ;;  %733 = vadd.xlane.f32.xlu0 %v721_v9  ;;  %v1471_v12 = vmul.f32 %v1191_v10, %v1443_v25  ;;  %v722_v15 = vmul.f32 %v1007_v62, %v1463_v7  ;;  %v1193_v16 = vpop.eup %1192 }
 0x280   :  { %v1476_v13 = vmul.f32 %v1193_v16, %v1447_v35  ;;  %v717_v18 = vmul.f32 %v1007_v62, %v1468_v11 }
 0x281   :  { %v720_v17 = vmul.f32 %v1007_v62, %v1471_v12 }
 0x282   :  { %v718_v19 = vmul.f32 %v1007_v62, %v1476_v13 }
 0x283   :  { %729 = vadd.xlane.f32.xlu1 %v719_v14  ;;  %735 = vadd.xlane.f32.xlu0 %v722_v15 }
 0x287   :  { %731 = vadd.xlane.f32.xlu0 %v720_v17  ;;  %725 = vadd.xlane.f32.xlu1 %v717_v18 }
 0x28b   :  { %727 = vadd.xlane.f32.xlu0 %v718_v19 }
 0x304   :  { %v738_v21 = vpop.xlane.xlu0 %737 }
 0x305   :  { %v754_v23 = vadd.f32 %v1008_v20, %v738_v21  ;;  %v853_v21 = vshrl.u32 %v128_v27, 7 }
 0x307   :  { %v1015_v24 = vmul.f32 -1.442695, %v754_v23 }
 0x308   :  { %v740_v25 = vpop.xlane.xlu1 %739  ;;  %v734_v26 = vpop.xlane.xlu0 %733 }
 0x309   :  { %1194 = vpow2.f32 %v1015_v24  ;;  %v755_v28 = vadd.f32 %v1008_v20, %v740_v25  ;;  %v752_v29 = vadd.f32 %v1008_v20, %v734_v26 }
 0x30b   :  { %v1016_v30 = vmul.f32 -1.442695, %v755_v28  ;;  %v1013_v31 = vmul.f32 -1.442695, %v752_v29  ;;  %v854_v28 = vadd.s32 8, %v853_v21 }
 0x30c   :  { %v730_v32 = vpop.xlane.xlu1 %729  ;;  %v736_v33 = vpop.xlane.xlu0 %735 }
 0x30d   :  { %1196 = vpow2.f32 %v1016_v30  ;;  %v750_v34 = vadd.f32 %v1008_v20, %v730_v32  ;;  %v753_v35 = vadd.f32 %v1008_v20, %v736_v33 }
 0x30e   :  { %1198 = vpow2.f32 %v1013_v31 }
 0x30f   :  { %v1011_v36 = vmul.f32 -1.442695, %v750_v34  ;;  %v1014_v37 = vmul.f32 -1.442695, %v753_v35 }
 0x310   :  { %v732_v38 = vpop.xlane.xlu0 %731  ;;  %v726_v39 = vpop.xlane.xlu1 %725 }
 0x311   :  { %1200 = vpow2.f32 %v1011_v36  ;;  %v751_v40 = vadd.f32 %v1008_v20, %v732_v38  ;;  %v748_v41 = vadd.f32 %v1008_v20, %v726_v39 }
 0x312   :  { %1202 = vpow2.f32 %v1014_v37 }
 0x313   :  { %v1012_v42 = vmul.f32 -1.442695, %v751_v40  ;;  %v1009_v43 = vmul.f32 -1.442695, %v748_v41 }
 0x314   :  { %v728_v44 = vpop.xlane.xlu0 %727 }
 0x315   :  { %1204 = vpow2.f32 %v1012_v42  ;;  %v749_v45 = vadd.f32 %v1008_v20, %v728_v44 }
 0x316   :  { %v1195_v46 = vpop.eup %1194  ;;  %1206 = vpow2.f32 %v1009_v43 }
 0x317   :  { %v786_v47 = vadd.f32 1.0, %v1195_v46  ;;  %v1010_v48 = vmul.f32 -1.442695, %v749_v45 }
 0x319   :  { %1208 = vrcp.f32 %v786_v47 }
 0x31a   :  { %v1197_v49 = vpop.eup %1196  ;;  %1210 = vpow2.f32 %v1010_v48 }
 0x31b   :  { %v1199_v50 = vpop.eup %1198  ;;  %v787_v51 = vadd.f32 1.0, %v1197_v49 }
 0x31c   :  { %v784_v52 = vadd.f32 1.0, %v1199_v50 }
 0x31d   :  { %1212 = vrcp.f32 %v787_v51 }
 0x31e   :  { %v1201_v53 = vpop.eup %1200  ;;  %1214 = vrcp.f32 %v784_v52 }
 0x31f   :  { %v1203_v54 = vpop.eup %1202  ;;  %v782_v55 = vadd.f32 1.0, %v1201_v53 }
 0x320   :  { %v785_v56 = vadd.f32 1.0, %v1203_v54 }
 0x321   :  { %1216 = vrcp.f32 %v782_v55 }
 0x322   :  { %v1205_v57 = vpop.eup %1204  ;;  %1218 = vrcp.f32 %v785_v56 }
 0x323   :  { %v1207_v58 = vpop.eup %1206  ;;  %v783_v59 = vadd.f32 1.0, %v1205_v57 }
 0x324   :  { %v780_v61 = vadd.f32 1.0, %v1207_v58 }
 0x325   :  { %1220 = vrcp.f32 %v783_v59 }
 0x326   :  { %v1209_v62 = vpop.eup %1208  ;;  %1222 = vrcp.f32 %v780_v61 }
 0x327   :  { %v1211_v63 = vpop.eup %1210  ;;  %836 = vperm.xlu1 %1115, %v1209_v62  }
 0x328   :  { %v781_v1 = vadd.f32 1.0, %v1211_v63 }
 0x32a   :  { %v1213_v2 = vpop.eup %1212  ;;  %1224 = vrcp.f32 %v781_v1 }
 0x32b   :  { %v1215_v4 = vpop.eup %1214  ;;  %841 = vperm.xlu0 %1114, %v1213_v2  }
 0x32c   :  { %826 = vperm.xlu1 %1115, %v1215_v4  }
 0x32e   :  { %v1217_v5 = vpop.eup %1216 }
 0x32f   :  { %v1219_v8 = vpop.eup %1218  ;;  %816 = vperm.xlu0 %1114, %v1217_v5  }
 0x330   :  { %831 = vperm.xlu1 %1115, %v1219_v8  }
 0x332   :  { %v1221_v9 = vpop.eup %1220 }
 0x333   :  { %v1223_v10 = vpop.eup %1222 }
 0x334   :  { %821 = vperm.xlu1 %1115, %v1221_v9   ;;  %806 = vperm.xlu0 %1114, %v1223_v10  }
 0x337   :  { %v1225_v14 = vpop.eup %1224 }
 0x338   :  { %811 = vperm.xlu1 %1115, %v1225_v14  }
 0x3a2   :  { %v837_v15 = vpop.permute.xlu1 %836 }
 0x3a3   :  { %v850_v17 = vmul.f32 %v837_v15, %v1450_v60  ;;  %v1017_v60 = vld [vmem:[%s1504_s2] ss:$0 sm:$0xff]  ;;  %s1251_s2 = smov [#allocation3]  }
 0x3a4   :  { %vm860_vm12 = vcmp.eq.s32.totalorder %v853_v21, %v1017_v60  ;;  %vm861_vm13 = vcmp.eq.s32.totalorder %v854_v28, %v1017_v60  ;;  %s927_s17 = sshll.u32 %s1251_s2, 4  ;;  %s928_s17 = int_to_ptr.vmem [resolvable:$true] %s927_s17 }
 0x3a5   :  { %v1018_v34 = vsel %vm860_vm12, 1.0, %v1249_v22  ;;  %v1019_v35 = vsel %vm861_vm13, 1.0, %v1249_v22  ;;  %s1226_s18 = scalar_lea.vmem %s928_s17, 256  ;;  %p1231_p1 = scmp.lt.s32.totalorder %s928_s17, %s928_s17 }
 0x3a6   :  { %v842_v16 = vpop.permute.xlu0 %841  ;;  %p1227_p0 = scmp.ne.s32.totalorder %s928_s17, %s1226_s18  ;;  %p1232_p2 = scmp.lt.s32.totalorder %s1226_s18, %s1226_s18 }
 0x3a7   :  { %v851_v18 = vmul.f32 %v842_v16, %v1458_v3  ;;  %v827_v19 = vpop.permute.xlu1 %826 }
 0x3a8   :  { %v848_v25 = vmul.f32 %v827_v19, %v1455_v0  ;;  %p1233_p3 = por %p1232_p2, %p1231_p1 }
 0x3a9   :  { %v872_v20 = vpack.c.bf16 %v851_v18, %v850_v17 }
 0x3aa   :  { %v817_v23 = vpop.permute.xlu0 %816  ;;  %p1234_p4 = pnand %p1233_p3, %p1227_p0 }
 0x3ab   :  { %v832_v24 = vpop.permute.xlu1 %831  ;;  %1096 = vmatpush3.bf16.msra.mxu1 %v872_v20  ;;  %v846_v30 = vmul.f32 %v817_v23, %v1461_v6 }
 0x3ac   :  { %v849_v26 = vmul.f32 %v832_v24, %v1463_v7  ;;  %1097 = vmatprep.subr.bf16.mxu1 %v1249_v22 }
 0x3ae   :  { %v871_v29 = vpack.c.bf16 %v849_v26, %v848_v25 }
 0x3af   :  { %v822_v3 = vpop.permute.xlu1 %821  ;;  %v807_v31 = vpop.permute.xlu0 %806 }
 0x3b0   :  { %v847_v27 = vmul.f32 %v822_v3, %v1471_v12  ;;  %1098 = vmatpush3.bf16.msra.mxu1 %v871_v29  ;;  %v844_v32 = vmul.f32 %v807_v31, %v1468_v11  ;;  %v866_v12 = vpack.c.bf16 %v1019_v35, %v1018_v34 }
 0x3b1   :  { %1099 = vmatprep.subr.bf16.mxu1 %v1249_v22 }
 0x3b2   :  { %v870_v0 = vpack.c.bf16 %v847_v27, %v846_v30 }
 0x3b3   :  { %v812_v7 = vpop.permute.xlu1 %811 }
 0x3b4   :  { %v845_v33 = vmul.f32 %v812_v7, %v1476_v13  ;;  %1100 = vmatpush3.bf16.msra.mxu1 %v870_v0 }
 0x3b5   :  { %1101 = vmatprep.subr.bf16.mxu1 %v1249_v22 }
 0x3b6   :  { %v869_v6 = vpack.c.bf16 %v845_v33, %v844_v32 }
 0x3b8   :  { %1102 = vmatpush3.bf16.msra.mxu1 %v869_v6 }
 0x3bb   :  { %1104 = vmatmul.mubr.msk.bf16.vlgmr.msra.gmra.mxu1 %vm873_vm14, %v866_v12 }
 0x47b   :  { %v911_v36 = vpop.f32.mrf.mxu1 }
 0x47c   :  { %920 = vst [vmem:[#allocation3] sm:$0xff] %v911_v36 }
 0x47d   :  { %v1105_v37 = vpop.f32.mrf.mxu1 }
 0x47f   :  { %v914_v11 = vpop.f32.mrf.mxu1 }
 0x480   :  { %921 = vst [vmem:[#allocation3 + $0x8] sm:$0xff] %v914_v11 }
 0x481   :  { %v1106_v13 = vpop.f32.mrf.mxu1 }
 0x482   :  { %1237 = shalt.err (!%p1234_p4)
}
 0x483   :  { %s1252_s5 = smov 128   ;;  %s1253_s19 = smov 8  }
 0x484   :  { %933 = dma.vmem_to_hbm [thread:$0]  %s928_s17, 256, %s1513_s11, [#allocation4], %s1252_s5, %s1252_s5, %s1253_s19  }
 0x485   :  { %1246 = dma.done.wait [#allocation4], 256  }
 0x486   :  { %1247 = vsyncadd [#allocation4], 4294967040 }
 0x487   :  { %937 = vsyncpa [#allocation4], 1 }

</bundles_post_ra>
